<compile_context>
chip_gen: v5e
topology: v5e:2x2
jax: 0.10.0
libtpu: 0.0.40
codegen_flags: <defaults>
</compile_context>

<pallas_src>
import functools
import math

import jax
import jax.numpy as jnp
from jax import lax
from jax.experimental import pallas as pl
from jax.experimental.pallas import tpu as pltpu

BN_EPS = 1e-5


def _round_up(x, m):
    return (x + m - 1) // m * m


# ---------------------------------------------------------------------------
# Adaptive tile selection for the fused matmul (1x1 convs / downsample).
# ---------------------------------------------------------------------------
def _pick_tiles(M, N, K):
    # Reduction dim: full-dim block when small (no padded MXU work), else 512.
    if K <= 512:
        TK, Kp = K, K
    else:
        TK, Kp = 512, _round_up(K, 512)
    # Output-channel (lane) dim: full-dim when <=256, else 256-wide tiles
    # (matches the 256-wide MXU on v6e/v7x).
    if N <= 256:
        TN, Np = N, N
    else:
        TN, Np = 256, _round_up(N, 256)
    # Row dim: expose >=2 parallel M blocks when possible (v7x has 2 TCs),
    # cap the tile at 512 rows for large-M early-stage convs.
    if M <= 16:
        TM = _round_up(M, 8)
        Mp = TM
    elif M <= 1024:
        TM = _round_up((M + 1) // 2, 8)
        Mp = _round_up(M, TM)
    else:
        TM = 512
        Mp = _round_up(M, 512)
    return TM, TN, TK, Mp, Np, Kp


# ---------------------------------------------------------------------------
# Fused matmul kernel:  out = act((A @ B) * scale + shift [+ residual])
#   A,B are bf16; accumulation is f32 in VMEM scratch; scale/shift fold BN.
#   Two variants: with and without the residual operand (no zero residual).
# ---------------------------------------------------------------------------
def _mm_kernel(*refs, act, has_res):
    if has_res:
        a_ref, b_ref, s_ref, t_ref, r_ref, o_ref, acc_ref = refs
    else:
        a_ref, b_ref, s_ref, t_ref, o_ref, acc_ref = refs
        r_ref = None

    @pl.when(pl.program_id(2) == 0)
    def _():
        acc_ref[...] = jnp.zeros_like(acc_ref)

    acc_ref[...] += jnp.dot(a_ref[...], b_ref[...],
                            preferred_element_type=jnp.float32)

    @pl.when(pl.program_id(2) == pl.num_programs(2) - 1)
    def _():
        y = acc_ref[...] * s_ref[...] + t_ref[...]
        if has_res:
            y = y + r_ref[...]
        if act == "relu":
            y = jnp.maximum(y, 0.0)
        o_ref[...] = y.astype(o_ref.dtype)


def matmul_bn_act(a, b, scale, shift, residual=None, act="relu"):
    """a:(M,K) @ b:(K,N) with per-column scale/shift:(N,), optional residual:(M,N)."""
    M, K = a.shape
    K2, N = b.shape
    assert K2 == K
    TM, TN, TK, Mp, Np, Kp = _pick_tiles(M, N, K)

    a_bf = a.astype(jnp.bfloat16)
    b_bf = b.astype(jnp.bfloat16)
    if (Mp, Kp) != (M, K):
        a_bf = jnp.pad(a_bf, ((0, Mp - M), (0, Kp - K)))
    if (Kp, Np) != (K, N):
        b_bf = jnp.pad(b_bf, ((0, Kp - K), (0, Np - N)))
    s2 = scale.reshape(1, N).astype(jnp.float32)
    t2 = shift.reshape(1, N).astype(jnp.float32)
    if Np != N:
        s2 = jnp.pad(s2, ((0, 0), (0, Np - N)))
        t2 = jnp.pad(t2, ((0, 0), (0, Np - N)))

    has_res = residual is not None
    in_specs = [
        pl.BlockSpec((TM, TK), lambda i, j, k: (i, k)),
        pl.BlockSpec((TK, TN), lambda i, j, k: (k, j)),
        pl.BlockSpec((1, TN), lambda i, j, k: (0, j)),
        pl.BlockSpec((1, TN), lambda i, j, k: (0, j)),
    ]
    inputs = [a_bf, b_bf, s2, t2]
    if has_res:
        r2 = residual.astype(jnp.float32)
        if (Mp, Np) != (M, N):
            r2 = jnp.pad(r2, ((0, Mp - M), (0, Np - N)))
        in_specs.append(pl.BlockSpec((TM, TN), lambda i, j, k: (i, j)))
        inputs.append(r2)

    out = pl.pallas_call(
        functools.partial(_mm_kernel, act=act, has_res=has_res),
        out_shape=jax.ShapeDtypeStruct((Mp, Np), jnp.float32),
        grid_spec=pltpu.PrefetchScalarGridSpec(
            num_scalar_prefetch=0,
            grid=(Mp // TM, Np // TN, Kp // TK),
            in_specs=in_specs,
            out_specs=pl.BlockSpec((TM, TN), lambda i, j, k: (i, j)),
            scratch_shapes=[pltpu.VMEM((TM, TN), jnp.float32)],
        ),
        compiler_params=pltpu.CompilerParams(
            dimension_semantics=("parallel", "parallel", "arbitrary")),
    )(*inputs)
    if (Mp, Np) != (M, N):
        out = out[:M, :N]
    return out


# ---------------------------------------------------------------------------
# Direct 3x3 conv + BN + ReLU kernel (no im2col).
# Grid = (batch, out_row); three shifted BlockSpecs of the padded NHWC input
# deliver input rows (row + 0/1/2); the 9 taps are accumulated in-register.
# ---------------------------------------------------------------------------
def _conv3x3_kernel(x0_ref, x1_ref, x2_ref, w_ref, s_ref, t_ref, o_ref,
                    *, stride, wo):
    kh, kw, _, o_ch = w_ref.shape
    rows = (x0_ref, x1_ref, x2_ref)
    acc = jnp.zeros((wo, o_ch), jnp.float32)
    for dy in range(kh):
        for dx in range(kw):
            if stride == 1:
                patch = rows[dy][pl.ds(dx, wo), :]
            else:
                patch = rows[dy][pl.ds(dx, wo, stride=stride), :]
            acc = acc + jnp.dot(patch, w_ref[dy, dx],
                                preferred_element_type=jnp.float32)
    y = acc * s_ref[...] + t_ref[...]
    o_ref[...] = jnp.maximum(y, 0.0).astype(o_ref.dtype)


def conv3x3_bn_relu(x, w, scale, shift, stride):
    """x: (N,H,W,C) f32; w: (O,C,3,3) PyTorch layout; padding=1 (Bottleneck conv2)."""
    n, h, wdt, c = x.shape
    o_ch, c_in, kh, kw = w.shape
    assert (kh, kw) == (3, 3) and c_in == c
    pad = 1
    x_p = jnp.pad(x, ((0, 0), (pad, pad), (pad, pad), (0, 0))).astype(jnp.bfloat16)
    hp, wp = h + 2 * pad, wdt + 2 * pad
    ho = (hp - kh) // stride + 1
    wo = (wp - kw) // stride + 1
    w_r = jnp.transpose(w, (2, 3, 1, 0)).astype(jnp.bfloat16)   # (kh,kw,C,O)
    s2 = scale.reshape(1, o_ch).astype(jnp.float32)
    t2 = shift.reshape(1, o_ch).astype(jnp.float32)

    row_specs = [
        pl.BlockSpec((None, None, wp, c),
                     (lambda nn, hh, dy=dy: (nn, hh * stride + dy, 0, 0)))
        for dy in range(kh)
    ]
    in_specs = row_specs + [
        pl.BlockSpec((kh, kw, c, o_ch), lambda nn, hh: (0, 0, 0, 0)),
        pl.BlockSpec((1, o_ch), lambda nn, hh: (0, 0)),
        pl.BlockSpec((1, o_ch), lambda nn, hh: (0, 0)),
    ]
    return pl.pallas_call(
        functools.partial(_conv3x3_kernel, stride=stride, wo=wo),
        out_shape=jax.ShapeDtypeStruct((n, ho, wo, o_ch), jnp.float32),
        grid_spec=pltpu.PrefetchScalarGridSpec(
            num_scalar_prefetch=0,
            grid=(n, ho),
            in_specs=in_specs,
            out_specs=pl.BlockSpec((None, None, wo, o_ch),
                                   lambda nn, hh: (nn, hh, 0, 0)),
        ),
        compiler_params=pltpu.CompilerParams(
            dimension_semantics=("parallel", "parallel")),
    )(x_p, x_p, x_p, w_r, s2, t2)


# ---------------------------------------------------------------------------
# 1x1 conv (optionally strided) = pure matmul over flattened spatial positions.
# ---------------------------------------------------------------------------
def conv1x1_bn(x, w, scale, shift, *, stride=1, residual=None, act="relu"):
    if stride > 1:
        x = x[:, ::stride, ::stride, :]
    n, h, wdt, c = x.shape
    o_ch = w.shape[0]
    a = x.reshape(n * h * wdt, c)
    bmat = w.reshape(o_ch, c).T                       # (C, O)
    res = residual.reshape(n * h * wdt, o_ch) if residual is not None else None
    y = matmul_bn_act(a, bmat, scale, shift, residual=res, act=act)
    return y.reshape(n, h, wdt, o_ch)


# ---------------------------------------------------------------------------
# Bottleneck forward.
# ---------------------------------------------------------------------------
def fold_bn(bn):
    scale = bn["gamma"] / jnp.sqrt(bn["var"] + BN_EPS)
    shift = bn["beta"] - bn["mean"] * scale
    return scale, shift


def bottleneck_forward(p, x):
    """x: (N,H,W,C) NHWC float32."""
    stride = p["stride"]
    s1, t1 = fold_bn(p["bn1"])
    out = conv1x1_bn(x, p["conv1_w"], s1, t1, act="relu")                # conv1+bn1+relu
    s2, t2 = fold_bn(p["bn2"])
    out = conv3x3_bn_relu(out, p["conv2_w"], s2, t2, stride)             # conv2+bn2+relu
    if "down_w" in p:
        sd, td = fold_bn(p["bn_d"])
        residual = conv1x1_bn(x, p["down_w"], sd, td, stride=stride, act="none")
    else:
        residual = x                                                     # identity skip
    s3, t3 = fold_bn(p["bn3"])
    # conv3+bn3 + residual add + relu fused into one kernel epilogue
    out = conv1x1_bn(out, p["conv3_w"], s3, t3, residual=residual, act="relu")
    return out


def bottleneck_nchw(p, x_nchw):
    x = jnp.transpose(x_nchw, (0, 2, 3, 1)).astype(jnp.float32)          # NCHW -> NHWC
    y = bottleneck_forward(p, x)
    return jnp.transpose(y, (0, 3, 1, 2))                                # NHWC -> NCHW


# ---------------------------------------------------------------------------
# Pure-JAX reference (mirrors the kernel's bf16 operand quantization).
# ---------------------------------------------------------------------------
def _ref_conv(x, w, stride, padding):
    return lax.conv_general_dilated(
        x, jnp.transpose(w, (2, 3, 1, 0)),
        window_strides=(stride, stride),
        padding=[(padding, padding), (padding, padding)],
        dimension_numbers=("NHWC", "HWIO", "NHWC"),
        precision=lax.Precision.HIGHEST)


def ref_bottleneck_nchw(p, x_nchw):
    q = lambda t: t.astype(jnp.bfloat16).astype(jnp.float32)
    x = jnp.transpose(x_nchw, (0, 2, 3, 1)).astype(jnp.float32)

    def bn(y, bnp):
        sc, sh = fold_bn(bnp)
        return y * sc + sh

    out = jax.nn.relu(bn(_ref_conv(q(x), q(p["conv1_w"]), 1, 0), p["bn1"]))
    out = jax.nn.relu(bn(_ref_conv(q(out), q(p["conv2_w"]), p["stride"], 1), p["bn2"]))
    if "down_w" in p:
        residual = bn(_ref_conv(q(x), q(p["down_w"]), p["stride"], 0), p["bn_d"])
    else:
        residual = x
    out = jax.nn.relu(bn(_ref_conv(q(out), q(p["conv3_w"]), 1, 0), p["bn3"]) + residual)
    return jnp.transpose(out, (0, 3, 1, 2))


# ---------------------------------------------------------------------------
# Deterministic parameter init (shapes follow the module __init__).
# ---------------------------------------------------------------------------
def init_block(key, inplanes, planes, stride, with_downsample):
    ks = list(jax.random.split(key, 8))

    def conv_w(k, cout, cin, ksz):
        std = 0.5 * math.sqrt(2.0 / (ksz * ksz * cin))
        return std * jax.random.normal(k, (cout, cin, ksz, ksz), jnp.float32)

    def bn_params(k, c):
        k1, k2, k3, k4 = jax.random.split(k, 4)
        return {
            "gamma": 1.0 + 0.1 * jax.random.normal(k1, (c,), jnp.float32),
            "beta": 0.1 * jax.random.normal(k2, (c,), jnp.float32),
            "mean": 0.1 * jax.random.normal(k3, (c,), jnp.float32),
            "var": 1.0 + 0.25 * jax.random.uniform(k4, (c,), jnp.float32),
        }

    p = {
        "stride": stride,
        "conv1_w": conv_w(ks[0], planes, inplanes, 1),
        "bn1": bn_params(ks[1], planes),
        "conv2_w": conv_w(ks[2], planes, planes, 3),
        "bn2": bn_params(ks[3], planes),
        "conv3_w": conv_w(ks[4], planes * 4, planes, 1),
        "bn3": bn_params(ks[5], planes * 4),
    }
    if with_downsample:
        p["down_w"] = conv_w(ks[6], planes * 4, inplanes, 1)
        p["bn_d"] = bn_params(ks[7], planes * 4)
    return p


if __name__ == "__main__":
    key = jax.random.PRNGKey(0)
    kx1, kx2, kp1, kp2 = jax.random.split(key, 4)

    inplanes, planes = 32, 8    # inplanes == planes*4 -> identity skip is legal

    # Block A: stride=1, downsample=None (identity residual)
    x_a = jax.random.normal(kx1, (2, inplanes, 16, 16), jnp.float32)     # NCHW
    p_a = init_block(kp1, inplanes, planes, stride=1, with_downsample=False)

    # Block B: stride=2, 1x1-conv+BN downsample on the skip path
    x_b = jax.random.normal(kx2, (2, inplanes, 16, 16), jnp.float32)     # NCHW
    p_b = init_block(kp2, inplanes, planes, stride=2, with_downsample=True)

    f_a = jax.jit(lambda x: bottleneck_nchw(p_a, x))
    f_b = jax.jit(lambda x: bottleneck_nchw(p_b, x))

    y_a = jax.block_until_ready(f_a(x_a))
    y_b = jax.block_until_ready(f_b(x_b))

    assert y_a.shape == (2, planes * 4, 16, 16), y_a.shape
    assert y_b.shape == (2, planes * 4, 8, 8), y_b.shape
    assert bool(jnp.all(jnp.isfinite(y_a))) and bool(jnp.all(jnp.isfinite(y_b)))

    r_a = ref_bottleneck_nchw(p_a, x_a)
    r_b = ref_bottleneck_nchw(p_b, x_b)
    err_a = float(jnp.max(jnp.abs(y_a - r_a)))
    err_b = float(jnp.max(jnp.abs(y_b - r_b)))
    assert err_a < 2e-2 and err_b < 2e-2, (err_a, err_b)

    print("KERNEL_OK")
</pallas_src>

<mosaic_0001>
module attributes {stable_mosaic.version = 11 : i64} {
  func.func @_mm_kernel(%arg0: i32, %arg1: i32, %arg2: i32, %arg3: memref<256x32xbf16, #tpu.memory_space<vmem>>, %arg4: memref<32x8xbf16, #tpu.memory_space<vmem>>, %arg5: memref<1x8xf32, #tpu.memory_space<vmem>>, %arg6: memref<1x8xf32, #tpu.memory_space<vmem>>, %arg7: memref<256x8xf32, #tpu.memory_space<vmem>>, %arg8: memref<256x8xf32, #tpu.memory_space<vmem>>) attributes {dimension_semantics = [#tpu.dimension_semantics<parallel>, #tpu.dimension_semantics<parallel>, #tpu.dimension_semantics<arbitrary>], iteration_bounds = array<i64: 2, 1, 1>, scalar_prefetch = 0 : i64, scratch_operands = 1 : i64, tpu.core_type = #tpu.core_type<tc>, window_params = [{transform_indices = @transform_0, window_bounds = array<i64: 256, 32>}, {transform_indices = @transform_1, window_bounds = array<i64: 32, 8>}, {transform_indices = @transform_2, window_bounds = array<i64: 1, 8>}, {transform_indices = @transform_3, window_bounds = array<i64: 1, 8>}, {transform_indices = @transform_4, window_bounds = array<i64: 256, 8>}]} {
    %c0_i32 = arith.constant 0 : i32
    %0 = arith.cmpi eq, %arg2, %c0_i32 : i32
    %1 = arith.extui %0 : i1 to i32
    %c0_i32_0 = arith.constant 0 : i32
    %2 = arith.cmpi ne, %1, %c0_i32_0 : i32
    scf.if %2 {
      %cst_10 = arith.constant 0.000000e+00 : f32
      %12 = vector.broadcast %cst_10 : f32 to vector<256x8xf32>
      %c0_11 = arith.constant 0 : index
      %c0_12 = arith.constant 0 : index
      %13 = vector.load %arg8[%c0_11, %c0_12] : memref<256x8xf32, #tpu.memory_space<vmem>>, vector<256x8xf32>
      tpu.vector_store %arg8[%c0_11, %c0_12], %12 {strides = array<i32>} : memref<256x8xf32, #tpu.memory_space<vmem>>, vector<256x8xf32>,
    } else {
    }
    %c0 = arith.constant 0 : index
    %c0_1 = arith.constant 0 : index
    %3 = vector.load %arg8[%c0, %c0_1] : memref<256x8xf32, #tpu.memory_space<vmem>>, vector<256x8xf32>
    %c0_2 = arith.constant 0 : index
    %c0_3 = arith.constant 0 : index
    %4 = vector.load %arg3[%c0_2, %c0_3] : memref<256x32xbf16, #tpu.memory_space<vmem>>, vector<256x32xbf16>
    %c0_4 = arith.constant 0 : index
    %c0_5 = arith.constant 0 : index
    %5 = vector.load %arg4[%c0_4, %c0_5] : memref<32x8xbf16, #tpu.memory_space<vmem>>, vector<32x8xbf16>
    %cst = arith.constant dense<0.000000e+00> : vector<256x8xf32>
    %6 = tpu.matmul %4, %5, %cst {dimension_numbers = #tpu.dot_dimension_numbers<[1], [0], [0], [1], [0, 0, 1, 1], [], []>} : vector<256x32xbf16>, vector<32x8xbf16>, vector<256x8xf32> -> vector<256x8xf32>
    %7 = arith.addf %3, %6 : vector<256x8xf32>
    %c0_6 = arith.constant 0 : index
    %c0_7 = arith.constant 0 : index
    %8 = vector.load %arg8[%c0_6, %c0_7] : memref<256x8xf32, #tpu.memory_space<vmem>>, vector<256x8xf32>
    tpu.vector_store %arg8[%c0_6, %c0_7], %7 {strides = array<i32>} : memref<256x8xf32, #tpu.memory_space<vmem>>, vector<256x8xf32>,
    %c0_i32_8 = arith.constant 0 : i32
    %9 = arith.cmpi eq, %arg2, %c0_i32_8 : i32
    %10 = arith.extui %9 : i1 to i32
    %c0_i32_9 = arith.constant 0 : i32
    %11 = arith.cmpi ne, %10, %c0_i32_9 : i32
    scf.if %11 {
      %c0_10 = arith.constant 0 : index
      %c0_11 = arith.constant 0 : index
      %12 = vector.load %arg8[%c0_10, %c0_11] : memref<256x8xf32, #tpu.memory_space<vmem>>, vector<256x8xf32>
      %c0_12 = arith.constant 0 : index
      %c0_13 = arith.constant 0 : index
      %13 = vector.load %arg5[%c0_12, %c0_13] : memref<1x8xf32, #tpu.memory_space<vmem>>, vector<1x8xf32>
      %14 = vector.broadcast %13 : vector<1x8xf32> to vector<256x8xf32>
      %15 = arith.mulf %12, %14 : vector<256x8xf32>
      %c0_14 = arith.constant 0 : index
      %c0_15 = arith.constant 0 : index
      %16 = vector.load %arg6[%c0_14, %c0_15] : memref<1x8xf32, #tpu.memory_space<vmem>>, vector<1x8xf32>
      %17 = vector.broadcast %16 : vector<1x8xf32> to vector<256x8xf32>
      %18 = arith.addf %15, %17 : vector<256x8xf32>
      %cst_16 = arith.constant 0.000000e+00 : f32
      %19 = vector.broadcast %cst_16 : f32 to vector<256x8xf32>
      %20 = arith.maximumf %18, %19 : vector<256x8xf32>
      %c0_17 = arith.constant 0 : index
      %c0_18 = arith.constant 0 : index
      %21 = vector.load %arg7[%c0_17, %c0_18] : memref<256x8xf32, #tpu.memory_space<vmem>>, vector<256x8xf32>
      tpu.vector_store %arg7[%c0_17, %c0_18], %20 {strides = array<i32>} : memref<256x8xf32, #tpu.memory_space<vmem>>, vector<256x8xf32>,
    } else {
    }
    return
  }
  func.func @transform_0(%arg0: i32, %arg1: i32, %arg2: i32) -> (i32, i32) {
    %c0_i32 = arith.constant 0 : i32
    return %arg0, %arg2 : i32, i32
  }
  func.func @transform_1(%arg0: i32, %arg1: i32, %arg2: i32) -> (i32, i32) {
    %c0_i32 = arith.constant 0 : i32
    return %arg2, %arg1 : i32, i32
  }
  func.func @transform_2(%arg0: i32, %arg1: i32, %arg2: i32) -> (i32, i32) {
    %c0_i32 = arith.constant 0 : i32
    %c0_i32_0 = arith.constant 0 : i32
    return %c0_i32, %arg1 : i32, i32
  }
  func.func @transform_3(%arg0: i32, %arg1: i32, %arg2: i32) -> (i32, i32) {
    %c0_i32 = arith.constant 0 : i32
    %c0_i32_0 = arith.constant 0 : i32
    return %c0_i32, %arg1 : i32, i32
  }
  func.func @transform_4(%arg0: i32, %arg1: i32, %arg2: i32) -> (i32, i32) {
    %c0_i32 = arith.constant 0 : i32
    return %arg0, %arg1 : i32, i32
  }
}

module attributes {stable_mosaic.version = 11 : i64} {
  func.func @_conv3x3_kernel(%arg0: i32, %arg1: i32, %arg2: memref<1x1x18x8xbf16, #tpu.memory_space<vmem>>, %arg3: memref<1x1x18x8xbf16, #tpu.memory_space<vmem>>, %arg4: memref<1x1x18x8xbf16, #tpu.memory_space<vmem>>, %arg5: memref<3x3x8x8xbf16, #tpu.memory_space<vmem>>, %arg6: memref<1x8xf32, #tpu.memory_space<vmem>>, %arg7: memref<1x8xf32, #tpu.memory_space<vmem>>, %arg8: memref<1x1x16x8xf32, #tpu.memory_space<vmem>>) attributes {dimension_semantics = [#tpu.dimension_semantics<parallel>, #tpu.dimension_semantics<parallel>], iteration_bounds = array<i64: 2, 16>, scalar_prefetch = 0 : i64, scratch_operands = 0 : i64, tpu.core_type = #tpu.core_type<tc>, window_params = [{transform_indices = @transform_0, window_bounds = array<i64: 1, 1, 18, 8>}, {transform_indices = @transform_1, window_bounds = array<i64: 1, 1, 18, 8>}, {transform_indices = @transform_2, window_bounds = array<i64: 1, 1, 18, 8>}, {pipeline_mode = #tpu.pipeline_mode<synchronous>, transform_indices = @transform_3, window_bounds = array<i64: 3, 3, 8, 8>}, {pipeline_mode = #tpu.pipeline_mode<synchronous>, transform_indices = @transform_4, window_bounds = array<i64: 1, 8>}, {pipeline_mode = #tpu.pipeline_mode<synchronous>, transform_indices = @transform_5, window_bounds = array<i64: 1, 8>}, {transform_indices = @transform_6, window_bounds = array<i64: 1, 1, 16, 8>}]} {
    %cst = arith.constant 0.000000e+00 : f32
    %0 = vector.broadcast %cst : f32 to vector<16x8xf32>
    %c0 = arith.constant 0 : index
    %c0_0 = arith.constant 0 : index
    %c0_1 = arith.constant 0 : index
    %c0_2 = arith.constant 0 : index
    %1 = vector.load %arg2[%c0, %c0_0, %c0_1, %c0_2] : memref<1x1x18x8xbf16, #tpu.memory_space<vmem>>, vector<1x1x16x8xbf16>
    %2 = vector.shape_cast %1 : vector<1x1x16x8xbf16> to vector<16x8xbf16>
    %c0_3 = arith.constant 0 : index
    %c0_4 = arith.constant 0 : index
    %c0_5 = arith.constant 0 : index
    %c0_6 = arith.constant 0 : index
    %3 = vector.load %arg5[%c0_3, %c0_4, %c0_5, %c0_6] : memref<3x3x8x8xbf16, #tpu.memory_space<vmem>>, vector<1x1x8x8xbf16>
    %4 = vector.shape_cast %3 : vector<1x1x8x8xbf16> to vector<8x8xbf16>
    %cst_7 = arith.constant dense<0.000000e+00> : vector<16x8xf32>
    %5 = tpu.matmul %2, %4, %cst_7 {dimension_numbers = #tpu.dot_dimension_numbers<[1], [0], [0], [1], [0, 0, 1, 1], [], []>} : vector<16x8xbf16>, vector<8x8xbf16>, vector<16x8xf32> -> vector<16x8xf32>
    %6 = arith.addf %0, %5 : vector<16x8xf32>
    %c0_8 = arith.constant 0 : index
    %c0_9 = arith.constant 0 : index
    %c1 = arith.constant 1 : index
    %c0_10 = arith.constant 0 : index
    %7 = vector.load %arg2[%c0_8, %c0_9, %c1, %c0_10] : memref<1x1x18x8xbf16, #tpu.memory_space<vmem>>, vector<1x1x16x8xbf16>
    %8 = vector.shape_cast %7 : vector<1x1x16x8xbf16> to vector<16x8xbf16>
    %c0_11 = arith.constant 0 : index
    %c1_12 = arith.constant 1 : index
    %c0_13 = arith.constant 0 : index
    %c0_14 = arith.constant 0 : index
    %9 = vector.load %arg5[%c0_11, %c1_12, %c0_13, %c0_14] : memref<3x3x8x8xbf16, #tpu.memory_space<vmem>>, vector<1x1x8x8xbf16>
    %10 = vector.shape_cast %9 : vector<1x1x8x8xbf16> to vector<8x8xbf16>
    %cst_15 = arith.constant dense<0.000000e+00> : vector<16x8xf32>
    %11 = tpu.matmul %8, %10, %cst_15 {dimension_numbers = #tpu.dot_dimension_numbers<[1], [0], [0], [1], [0, 0, 1, 1], [], []>} : vector<16x8xbf16>, vector<8x8xbf16>, vector<16x8xf32> -> vector<16x8xf32>
    %12 = arith.addf %6, %11 : vector<16x8xf32>
    %c0_16 = arith.constant 0 : index
    %c0_17 = arith.constant 0 : index
    %c2 = arith.constant 2 : index
    %c0_18 = arith.constant 0 : index
    %13 = vector.load %arg2[%c0_16, %c0_17, %c2, %c0_18] : memref<1x1x18x8xbf16, #tpu.memory_space<vmem>>, vector<1x1x16x8xbf16>
    %14 = vector.shape_cast %13 : vector<1x1x16x8xbf16> to vector<16x8xbf16>
    %c0_19 = arith.constant 0 : index
    %c2_20 = arith.constant 2 : index
    %c0_21 = arith.constant 0 : index
    %c0_22 = arith.constant 0 : index
    %15 = vector.load %arg5[%c0_19, %c2_20, %c0_21, %c0_22] : memref<3x3x8x8xbf16, #tpu.memory_space<vmem>>, vector<1x1x8x8xbf16>
    %16 = vector.shape_cast %15 : vector<1x1x8x8xbf16> to vector<8x8xbf16>
    %cst_23 = arith.constant dense<0.000000e+00> : vector<16x8xf32>
    %17 = tpu.matmul %14, %16, %cst_23 {dimension_numbers = #tpu.dot_dimension_numbers<[1], [0], [0], [1], [0, 0, 1, 1], [], []>} : vector<16x8xbf16>, vector<8x8xbf16>, vector<16x8xf32> -> vector<16x8xf32>
    %18 = arith.addf %12, %17 : vector<16x8xf32>
    %c0_24 = arith.constant 0 : index
    %c0_25 = arith.constant 0 : index
    %c0_26 = arith.constant 0 : index
    %c0_27 = arith.constant 0 : index
    %19 = vector.load %arg3[%c0_24, %c0_25, %c0_26, %c0_27] : memref<1x1x18x8xbf16, #tpu.memory_space<vmem>>, vector<1x1x16x8xbf16>
    %20 = vector.shape_cast %19 : vector<1x1x16x8xbf16> to vector<16x8xbf16>
    %c1_28 = arith.constant 1 : index
    %c0_29 = arith.constant 0 : index
    %c0_30 = arith.constant 0 : index
    %c0_31 = arith.constant 0 : index
    %21 = vector.load %arg5[%c1_28, %c0_29, %c0_30, %c0_31] : memref<3x3x8x8xbf16, #tpu.memory_space<vmem>>, vector<1x1x8x8xbf16>
    %22 = vector.shape_cast %21 : vector<1x1x8x8xbf16> to vector<8x8xbf16>
    %cst_32 = arith.constant dense<0.000000e+00> : vector<16x8xf32>
    %23 = tpu.matmul %20, %22, %cst_32 {dimension_numbers = #tpu.dot_dimension_numbers<[1], [0], [0], [1], [0, 0, 1, 1], [], []>} : vector<16x8xbf16>, vector<8x8xbf16>, vector<16x8xf32> -> vector<16x8xf32>
    %24 = arith.addf %18, %23 : vector<16x8xf32>
    %c0_33 = arith.constant 0 : index
    %c0_34 = arith.constant 0 : index
    %c1_35 = arith.constant 1 : index
    %c0_36 = arith.constant 0 : index
    %25 = vector.load %arg3[%c0_33, %c0_34, %c1_35, %c0_36] : memref<1x1x18x8xbf16, #tpu.memory_space<vmem>>, vector<1x1x16x8xbf16>
    %26 = vector.shape_cast %25 : vector<1x1x16x8xbf16> to vector<16x8xbf16>
    %c1_37 = arith.constant 1 : index
    %c1_38 = arith.constant 1 : index
    %c0_39 = arith.constant 0 : index
    %c0_40 = arith.constant 0 : index
    %27 = vector.load %arg5[%c1_37, %c1_38, %c0_39, %c0_40] : memref<3x3x8x8xbf16, #tpu.memory_space<vmem>>, vector<1x1x8x8xbf16>
    %28 = vector.shape_cast %27 : vector<1x1x8x8xbf16> to vector<8x8xbf16>
    %cst_41 = arith.constant dense<0.000000e+00> : vector<16x8xf32>
    %29 = tpu.matmul %26, %28, %cst_41 {dimension_numbers = #tpu.dot_dimension_numbers<[1], [0], [0], [1], [0, 0, 1, 1], [], []>} : vector<16x8xbf16>, vector<8x8xbf16>, vector<16x8xf32> -> vector<16x8xf32>
    %30 = arith.addf %24, %29 : vector<16x8xf32>
    %c0_42 = arith.constant 0 : index
    %c0_43 = arith.constant 0 : index
    %c2_44 = arith.constant 2 : index
    %c0_45 = arith.constant 0 : index
    %31 = vector.load %arg3[%c0_42, %c0_43, %c2_44, %c0_45] : memref<1x1x18x8xbf16, #tpu.memory_space<vmem>>, vector<1x1x16x8xbf16>
    %32 = vector.shape_cast %31 : vector<1x1x16x8xbf16> to vector<16x8xbf16>
    %c1_46 = arith.constant 1 : index
    %c2_47 = arith.constant 2 : index
    %c0_48 = arith.constant 0 : index
    %c0_49 = arith.constant 0 : index
    %33 = vector.load %arg5[%c1_46, %c2_47, %c0_48, %c0_49] : memref<3x3x8x8xbf16, #tpu.memory_space<vmem>>, vector<1x1x8x8xbf16>
    %34 = vector.shape_cast %33 : vector<1x1x8x8xbf16> to vector<8x8xbf16>
    %cst_50 = arith.constant dense<0.000000e+00> : vector<16x8xf32>
    %35 = tpu.matmul %32, %34, %cst_50 {dimension_numbers = #tpu.dot_dimension_numbers<[1], [0], [0], [1], [0, 0, 1, 1], [], []>} : vector<16x8xbf16>, vector<8x8xbf16>, vector<16x8xf32> -> vector<16x8xf32>
    %36 = arith.addf %30, %35 : vector<16x8xf32>
    %c0_51 = arith.constant 0 : index
    %c0_52 = arith.constant 0 : index
    %c0_53 = arith.constant 0 : index
    %c0_54 = arith.constant 0 : index
    %37 = vector.load %arg4[%c0_51, %c0_52, %c0_53, %c0_54] : memref<1x1x18x8xbf16, #tpu.memory_space<vmem>>, vector<1x1x16x8xbf16>
    %38 = vector.shape_cast %37 : vector<1x1x16x8xbf16> to vector<16x8xbf16>
    %c2_55 = arith.constant 2 : index
    %c0_56 = arith.constant 0 : index
    %c0_57 = arith.constant 0 : index
    %c0_58 = arith.constant 0 : index
    %39 = vector.load %arg5[%c2_55, %c0_56, %c0_57, %c0_58] : memref<3x3x8x8xbf16, #tpu.memory_space<vmem>>, vector<1x1x8x8xbf16>
    %40 = vector.shape_cast %39 : vector<1x1x8x8xbf16> to vector<8x8xbf16>
    %cst_59 = arith.constant dense<0.000000e+00> : vector<16x8xf32>
    %41 = tpu.matmul %38, %40, %cst_59 {dimension_numbers = #tpu.dot_dimension_numbers<[1], [0], [0], [1], [0, 0, 1, 1], [], []>} : vector<16x8xbf16>, vector<8x8xbf16>, vector<16x8xf32> -> vector<16x8xf32>
    %42 = arith.addf %36, %41 : vector<16x8xf32>
    %c0_60 = arith.constant 0 : index
    %c0_61 = arith.constant 0 : index
    %c1_62 = arith.constant 1 : index
    %c0_63 = arith.constant 0 : index
    %43 = vector.load %arg4[%c0_60, %c0_61, %c1_62, %c0_63] : memref<1x1x18x8xbf16, #tpu.memory_space<vmem>>, vector<1x1x16x8xbf16>
    %44 = vector.shape_cast %43 : vector<1x1x16x8xbf16> to vector<16x8xbf16>
    %c2_64 = arith.constant 2 : index
    %c1_65 = arith.constant 1 : index
    %c0_66 = arith.constant 0 : index
    %c0_67 = arith.constant 0 : index
    %45 = vector.load %arg5[%c2_64, %c1_65, %c0_66, %c0_67] : memref<3x3x8x8xbf16, #tpu.memory_space<vmem>>, vector<1x1x8x8xbf16>
    %46 = vector.shape_cast %45 : vector<1x1x8x8xbf16> to vector<8x8xbf16>
    %cst_68 = arith.constant dense<0.000000e+00> : vector<16x8xf32>
    %47 = tpu.matmul %44, %46, %cst_68 {dimension_numbers = #tpu.dot_dimension_numbers<[1], [0], [0], [1], [0, 0, 1, 1], [], []>} : vector<16x8xbf16>, vector<8x8xbf16>, vector<16x8xf32> -> vector<16x8xf32>
    %48 = arith.addf %42, %47 : vector<16x8xf32>
    %c0_69 = arith.constant 0 : index
    %c0_70 = arith.constant 0 : index
    %c2_71 = arith.constant 2 : index
    %c0_72 = arith.constant 0 : index
    %49 = vector.load %arg4[%c0_69, %c0_70, %c2_71, %c0_72] : memref<1x1x18x8xbf16, #tpu.memory_space<vmem>>, vector<1x1x16x8xbf16>
    %50 = vector.shape_cast %49 : vector<1x1x16x8xbf16> to vector<16x8xbf16>
    %c2_73 = arith.constant 2 : index
    %c2_74 = arith.constant 2 : index
    %c0_75 = arith.constant 0 : index
    %c0_76 = arith.constant 0 : index
    %51 = vector.load %arg5[%c2_73, %c2_74, %c0_75, %c0_76] : memref<3x3x8x8xbf16, #tpu.memory_space<vmem>>, vector<1x1x8x8xbf16>
    %52 = vector.shape_cast %51 : vector<1x1x8x8xbf16> to vector<8x8xbf16>
    %cst_77 = arith.constant dense<0.000000e+00> : vector<16x8xf32>
    %53 = tpu.matmul %50, %52, %cst_77 {dimension_numbers = #tpu.dot_dimension_numbers<[1], [0], [0], [1], [0, 0, 1, 1], [], []>} : vector<16x8xbf16>, vector<8x8xbf16>, vector<16x8xf32> -> vector<16x8xf32>
    %54 = arith.addf %48, %53 : vector<16x8xf32>
    %c0_78 = arith.constant 0 : index
    %c0_79 = arith.constant 0 : index
    %55 = vector.load %arg6[%c0_78, %c0_79] : memref<1x8xf32, #tpu.memory_space<vmem>>, vector<1x8xf32>
    %56 = vector.broadcast %55 : vector<1x8xf32> to vector<16x8xf32>
    %57 = arith.mulf %54, %56 : vector<16x8xf32>
    %c0_80 = arith.constant 0 : index
    %c0_81 = arith.constant 0 : index
    %58 = vector.load %arg7[%c0_80, %c0_81] : memref<1x8xf32, #tpu.memory_space<vmem>>, vector<1x8xf32>
    %59 = vector.broadcast %58 : vector<1x8xf32> to vector<16x8xf32>
    %60 = arith.addf %57, %59 : vector<16x8xf32>
    %cst_82 = arith.constant 0.000000e+00 : f32
    %61 = vector.broadcast %cst_82 : f32 to vector<16x8xf32>
    %62 = arith.maximumf %60, %61 : vector<16x8xf32>
    %c0_83 = arith.constant 0 : index
    %c0_84 = arith.constant 0 : index
    %c0_85 = arith.constant 0 : index
    %c0_86 = arith.constant 0 : index
    %63 = vector.load %arg8[%c0_83, %c0_84, %c0_85, %c0_86] : memref<1x1x16x8xf32, #tpu.memory_space<vmem>>, vector<1x1x16x8xf32>
    %64 = vector.shape_cast %63 : vector<1x1x16x8xf32> to vector<16x8xf32>
    %65 = vector.shape_cast %62 : vector<16x8xf32> to vector<1x1x16x8xf32>
    tpu.vector_store %arg8[%c0_83, %c0_84, %c0_85, %c0_86], %65 {strides = array<i32>} : memref<1x1x16x8xf32, #tpu.memory_space<vmem>>, vector<1x1x16x8xf32>,
    return
  }
  func.func @transform_0(%arg0: i32, %arg1: i32) -> (i32, i32, i32, i32) {
    %c1_i32 = arith.constant 1 : i32
    %0 = arith.muli %arg1, %c1_i32 : i32
    %c0_i32 = arith.constant 0 : i32
    %1 = arith.addi %0, %c0_i32 : i32
    %c0_i32_0 = arith.constant 0 : i32
    %c0_i32_1 = arith.constant 0 : i32
    %c0_i32_2 = arith.constant 0 : i32
    return %arg0, %1, %c0_i32_0, %c0_i32_1 : i32, i32, i32, i32
  }
  func.func @transform_1(%arg0: i32, %arg1: i32) -> (i32, i32, i32, i32) {
    %c1_i32 = arith.constant 1 : i32
    %0 = arith.muli %arg1, %c1_i32 : i32
    %c1_i32_0 = arith.constant 1 : i32
    %1 = arith.addi %0, %c1_i32_0 : i32
    %c0_i32 = arith.constant 0 : i32
    %c0_i32_1 = arith.constant 0 : i32
    %c0_i32_2 = arith.constant 0 : i32
    return %arg0, %1, %c0_i32, %c0_i32_1 : i32, i32, i32, i32
  }
  func.func @transform_2(%arg0: i32, %arg1: i32) -> (i32, i32, i32, i32) {
    %c1_i32 = arith.constant 1 : i32
    %0 = arith.muli %arg1, %c1_i32 : i32
    %c2_i32 = arith.constant 2 : i32
    %1 = arith.addi %0, %c2_i32 : i32
    %c0_i32 = arith.constant 0 : i32
    %c0_i32_0 = arith.constant 0 : i32
    %c0_i32_1 = arith.constant 0 : i32
    return %arg0, %1, %c0_i32, %c0_i32_0 : i32, i32, i32, i32
  }
  func.func @transform_3(%arg0: i32, %arg1: i32) -> (i32, i32, i32, i32) {
    %c0_i32 = arith.constant 0 : i32
    %c0_i32_0 = arith.constant 0 : i32
    %c0_i32_1 = arith.constant 0 : i32
    %c0_i32_2 = arith.constant 0 : i32
    %c0_i32_3 = arith.constant 0 : i32
    return %c0_i32, %c0_i32_0, %c0_i32_1, %c0_i32_2 : i32, i32, i32, i32
  }
  func.func @transform_4(%arg0: i32, %arg1: i32) -> (i32, i32) {
    %c0_i32 = arith.constant 0 : i32
    %c0_i32_0 = arith.constant 0 : i32
    %c0_i32_1 = arith.constant 0 : i32
    return %c0_i32, %c0_i32_0 : i32, i32
  }
  func.func @transform_5(%arg0: i32, %arg1: i32) -> (i32, i32) {
    %c0_i32 = arith.constant 0 : i32
    %c0_i32_0 = arith.constant 0 : i32
    %c0_i32_1 = arith.constant 0 : i32
    return %c0_i32, %c0_i32_0 : i32, i32
  }
  func.func @transform_6(%arg0: i32, %arg1: i32) -> (i32, i32, i32, i32) {
    %c0_i32 = arith.constant 0 : i32
    %c0_i32_0 = arith.constant 0 : i32
    %c0_i32_1 = arith.constant 0 : i32
    return %arg0, %arg1, %c0_i32, %c0_i32_0 : i32, i32, i32, i32
  }
}

module attributes {stable_mosaic.version = 11 : i64} {
  func.func @_mm_kernel(%arg0: i32, %arg1: i32, %arg2: i32, %arg3: memref<256x8xbf16, #tpu.memory_space<vmem>>, %arg4: memref<8x32xbf16, #tpu.memory_space<vmem>>, %arg5: memref<1x32xf32, #tpu.memory_space<vmem>>, %arg6: memref<1x32xf32, #tpu.memory_space<vmem>>, %arg7: memref<256x32xf32, #tpu.memory_space<vmem>>, %arg8: memref<256x32xf32, #tpu.memory_space<vmem>>, %arg9: memref<256x32xf32, #tpu.memory_space<vmem>>) attributes {dimension_semantics = [#tpu.dimension_semantics<parallel>, #tpu.dimension_semantics<parallel>, #tpu.dimension_semantics<arbitrary>], iteration_bounds = array<i64: 2, 1, 1>, scalar_prefetch = 0 : i64, scratch_operands = 1 : i64, tpu.core_type = #tpu.core_type<tc>, window_params = [{transform_indices = @transform_0, window_bounds = array<i64: 256, 8>}, {transform_indices = @transform_1, window_bounds = array<i64: 8, 32>}, {transform_indices = @transform_2, window_bounds = array<i64: 1, 32>}, {transform_indices = @transform_3, window_bounds = array<i64: 1, 32>}, {transform_indices = @transform_4, window_bounds = array<i64: 256, 32>}, {transform_indices = @transform_5, window_bounds = array<i64: 256, 32>}]} {
    %c0_i32 = arith.constant 0 : i32
    %0 = arith.cmpi eq, %arg2, %c0_i32 : i32
    %1 = arith.extui %0 : i1 to i32
    %c0_i32_0 = arith.constant 0 : i32
    %2 = arith.cmpi ne, %1, %c0_i32_0 : i32
    scf.if %2 {
      %cst_10 = arith.constant 0.000000e+00 : f32
      %12 = vector.broadcast %cst_10 : f32 to vector<256x32xf32>
      %c0_11 = arith.constant 0 : index
      %c0_12 = arith.constant 0 : index
      %13 = vector.load %arg9[%c0_11, %c0_12] : memref<256x32xf32, #tpu.memory_space<vmem>>, vector<256x32xf32>
      tpu.vector_store %arg9[%c0_11, %c0_12], %12 {strides = array<i32>} : memref<256x32xf32, #tpu.memory_space<vmem>>, vector<256x32xf32>,
    } else {
    }
    %c0 = arith.constant 0 : index
    %c0_1 = arith.constant 0 : index
    %3 = vector.load %arg9[%c0, %c0_1] : memref<256x32xf32, #tpu.memory_space<vmem>>, vector<256x32xf32>
    %c0_2 = arith.constant 0 : index
    %c0_3 = arith.constant 0 : index
    %4 = vector.load %arg3[%c0_2, %c0_3] : memref<256x8xbf16, #tpu.memory_space<vmem>>, vector<256x8xbf16>
    %c0_4 = arith.constant 0 : index
    %c0_5 = arith.constant 0 : index
    %5 = vector.load %arg4[%c0_4, %c0_5] : memref<8x32xbf16, #tpu.memory_space<vmem>>, vector<8x32xbf16>
    %cst = arith.constant dense<0.000000e+00> : vector<256x32xf32>
    %6 = tpu.matmul %4, %5, %cst {dimension_numbers = #tpu.dot_dimension_numbers<[1], [0], [0], [1], [0, 0, 1, 1], [], []>} : vector<256x8xbf16>, vector<8x32xbf16>, vector<256x32xf32> -> vector<256x32xf32>
    %7 = arith.addf %3, %6 : vector<256x32xf32>
    %c0_6 = arith.constant 0 : index
    %c0_7 = arith.constant 0 : index
    %8 = vector.load %arg9[%c0_6, %c0_7] : memref<256x32xf32, #tpu.memory_space<vmem>>, vector<256x32xf32>
    tpu.vector_store %arg9[%c0_6, %c0_7], %7 {strides = array<i32>} : memref<256x32xf32, #tpu.memory_space<vmem>>, vector<256x32xf32>,
    %c0_i32_8 = arith.constant 0 : i32
    %9 = arith.cmpi eq, %arg2, %c0_i32_8 : i32
    %10 = arith.extui %9 : i1 to i32
    %c0_i32_9 = arith.constant 0 : i32
    %11 = arith.cmpi ne, %10, %c0_i32_9 : i32
    scf.if %11 {
      %c0_10 = arith.constant 0 : index
      %c0_11 = arith.constant 0 : index
      %12 = vector.load %arg9[%c0_10, %c0_11] : memref<256x32xf32, #tpu.memory_space<vmem>>, vector<256x32xf32>
      %c0_12 = arith.constant 0 : index
      %c0_13 = arith.constant 0 : index
      %13 = vector.load %arg5[%c0_12, %c0_13] : memref<1x32xf32, #tpu.memory_space<vmem>>, vector<1x32xf32>
      %14 = vector.broadcast %13 : vector<1x32xf32> to vector<256x32xf32>
      %15 = arith.mulf %12, %14 : vector<256x32xf32>
      %c0_14 = arith.constant 0 : index
      %c0_15 = arith.constant 0 : index
      %16 = vector.load %arg6[%c0_14, %c0_15] : memref<1x32xf32, #tpu.memory_space<vmem>>, vector<1x32xf32>
      %17 = vector.broadcast %16 : vector<1x32xf32> to vector<256x32xf32>
      %18 = arith.addf %15, %17 : vector<256x32xf32>
      %c0_16 = arith.constant 0 : index
      %c0_17 = arith.constant 0 : index
      %19 = vector.load %arg7[%c0_16, %c0_17] : memref<256x32xf32, #tpu.memory_space<vmem>>, vector<256x32xf32>
      %20 = arith.addf %18, %19 : vector<256x32xf32>
      %cst_18 = arith.constant 0.000000e+00 : f32
      %21 = vector.broadcast %cst_18 : f32 to vector<256x32xf32>
      %22 = arith.maximumf %20, %21 : vector<256x32xf32>
      %c0_19 = arith.constant 0 : index
      %c0_20 = arith.constant 0 : index
      %23 = vector.load %arg8[%c0_19, %c0_20] : memref<256x32xf32, #tpu.memory_space<vmem>>, vector<256x32xf32>
      tpu.vector_store %arg8[%c0_19, %c0_20], %22 {strides = array<i32>} : memref<256x32xf32, #tpu.memory_space<vmem>>, vector<256x32xf32>,
    } else {
    }
    return
  }
  func.func @transform_0(%arg0: i32, %arg1: i32, %arg2: i32) -> (i32, i32) {
    %c0_i32 = arith.constant 0 : i32
    return %arg0, %arg2 : i32, i32
  }
  func.func @transform_1(%arg0: i32, %arg1: i32, %arg2: i32) -> (i32, i32) {
    %c0_i32 = arith.constant 0 : i32
    return %arg2, %arg1 : i32, i32
  }
  func.func @transform_2(%arg0: i32, %arg1: i32, %arg2: i32) -> (i32, i32) {
    %c0_i32 = arith.constant 0 : i32
    %c0_i32_0 = arith.constant 0 : i32
    return %c0_i32, %arg1 : i32, i32
  }
  func.func @transform_3(%arg0: i32, %arg1: i32, %arg2: i32) -> (i32, i32) {
    %c0_i32 = arith.constant 0 : i32
    %c0_i32_0 = arith.constant 0 : i32
    return %c0_i32, %arg1 : i32, i32
  }
  func.func @transform_4(%arg0: i32, %arg1: i32, %arg2: i32) -> (i32, i32) {
    %c0_i32 = arith.constant 0 : i32
    return %arg0, %arg1 : i32, i32
  }
  func.func @transform_5(%arg0: i32, %arg1: i32, %arg2: i32) -> (i32, i32) {
    %c0_i32 = arith.constant 0 : i32
    return %arg0, %arg1 : i32, i32
  }
}

</mosaic_0001>

<bundles_post_ra>
// kernel: _lambda_.4
= control target key start
LH: loop header
LB: loop body
LE: loop exit
PB: predicated region body
PF: predicated region fallthrough
CT: control target
= control target key end

     0   :  { %s1024_s21 = smov 0   ;;  %s1026_s22 = smov 0   ;;  %s1177_s0 = inlined_call_operand.vmem [shape: bf16[2,18,18,8], index: 0, kind: input, shape index: {}, may-alias: {0,1,2}]   ;;  %s1178_s1 = inlined_call_operand.vmem [shape: bf16[2,18,18,8], index: 1, kind: input, shape index: {}, may-alias: {0,1,2}]   ;;  %s1179_s2 = inlined_call_operand.vmem [shape: bf16[2,18,18,8], index: 2, kind: input, shape index: {}, may-alias: {0,1,2}]   ;;  %s1180_s3 = inlined_call_operand.vmem [shape: bf16[3,3,8,8], index: 3, kind: input, shape index: {}]   ;;  %s1181_s4 = inlined_call_operand.vmem [shape: f32[1,8], index: 4, kind: input, shape index: {}]   ;;  %s1182_s5 = inlined_call_operand.vmem [shape: f32[1,8], index: 5, kind: input, shape index: {}]   ;;  %s1183_s6 = inlined_call_operand.vmem [shape: f32[2,16,16,8], index: 6, kind: output, shape index: {}]  }
   0x1   :  { %s1028_s23 = smov 0   ;;  %s1030_s24 = smov 0  }
   0x2   :  { %s1032_s25 = smov 0  }
   0x3 LB: > { %s25_s26 = sadd.s32 1, %s979_s23  ;;  %s28_s27 = sadd.s32 1, %s983_s24  ;;  %s987_s25 = sphi %s1032_s25, %s16_s25   ;;  %s983_s24 = sphi %s1030_s24, %s1188_s24   ;;  %s979_s23 = sphi %s1028_s23, %s1187_s23   ;;  %s975_s22 = sphi %s1026_s22, %s1186_s22   ;;  %s971_s21 = sphi %s1024_s21, %s1185_s21  }
   0x4   : > { %p26_p0 = scmp.ge.s32.totalorder %s25_s26, 16  ;;  %p846_p1 = scmp.ge.s32.totalorder %s987_s25, 1 }
   0x5   : > { %p272_p2 = scmp.lt.s32.totalorder %s987_s25, 33 }
   0x6   : > { %s1190_s26 = smov (%p26_p0, %s25_s26), 0  ;;  %s1192_s27 = smov (!%p26_p0, %s28_s27), %s983_s24 }
   0x7   : > { %p273_p3 = pnand %p846_p1, %p272_p2  ;;  %p30_p4 = scmp.ge.s32.totalorder %s1192_s27, 2 }
   0x8   : > { %p330_p5 = scmp.lt.s32.totalorder (!%p273_p3), %s975_s22, 1  ;;  %p332_p6 = scmp.lt.s32.totalorder (!%p273_p3), %s971_s21, 17 }
   0x9   : > { %s1194_s27 = smov (%p30_p4, %s1192_s27), 0  ;;  %276 = sbr.rel (%p273_p3) target bundleno = 209 (0xd1), region = 44 }
   0xa   : > { %s339_s12 = sadd.s32 (!%p273_p3), 1, %s971_s21  ;;  %s350_s7 = sadd.s32 (!%p273_p3), 2, %s971_s21 }
   0xb   : > { %p342_p7 = scmp.lt.s32.totalorder (!%p273_p3), %s339_s12, 17  ;;  %p1098_p8 = scmp.lt.s32.totalorder (!%p273_p3), %s350_s7, 17 }
   0xc   : > { %p363_p9 = scmp.lt.s32.totalorder (!%p273_p3), %s971_s21, 15 }
   0xe   : > { %vm402_vm0 = vcmask 1043456   ;;  %v856_v0 = vld [vmem:[%s1180_s3 + $0x8] sm:$0xf]  ;;  %v853_v1 = vld [vmem:[%s1180_s3 + $0x4] sm:$0xf]  ;;  %s1196_s22 = smov (!%p330_p5, %s975_s22), 1 }
   0xf   : > { %v453_v2 = vsel %vm402_vm0, %v856_v0, 0  ;;  %v404_v3 = vsel %vm402_vm0, %v853_v1, 0  ;;  %v373_v4 = vld [vmem:[%s1180_s3] sm:$0xf]  ;;  %v858_v5 = vld [vmem:[%s1180_s3 + $0xc] sm:$0xf] }
  0x10   : > { %462 = vmatpush.bf16.msra.mxu2 %v453_v2  ;;  %413 = vmatpush.bf16.msra.mxu0 %v404_v3  ;;  %v423_v6 = vsel %vm402_vm0, %v373_v4, 0  ;;  %v484_v7 = vsel %vm402_vm0, %v858_v5, 0  ;;  %v864_v8 = vld [vmem:[%s1180_s3 + $0x10] sm:$0xf]  ;;  %s1080_s15 = smul.u32 54, %s1196_s22  ;;  %s1198_s12 = smov (!%p342_p7, %s339_s12), 17 }
  0x11   : > { %432 = vmatpush.bf16.msra.mxu1 %v423_v6  ;;  %493 = vmatpush.bf16.msra.mxu3 %v484_v7  ;;  %v531_v9 = vsel %vm402_vm0, %v864_v8, 0  ;;  %v868_v10 = vld [vmem:[%s1180_s3 + $0x18] sm:$0xf]  ;;  %s333_s18 = scalar_select %p332_p6, %s971_s21, 17  ;;  %v874_v12 = vld [vmem:[%s1180_s3 + $0x1c] sm:$0xf] }
  0x12   : > { %v593_v11 = vsel %vm402_vm0, %v868_v10, 0  ;;  %v866_v13 = vld [vmem:[%s1180_s3 + $0x14] sm:$0xf]  ;;  %v640_v14 = vsel %vm402_vm0, %v874_v12, 0  ;;  %s905_s8 = smul.u32 3, %s1198_s12  ;;  %vm398_vm1 = vcmask 64512  }
  0x13   : > { %v562_v15 = vsel %vm402_vm0, %v866_v13, 0  ;;  %s903_s30 = smul.u32 3, %s333_s18  ;;  %s1200_s7 = smov (!%p1098_p8, %s350_s7), 17  ;;  %vm445_vm2 = vcmask 1046528   ;;  %v876_v34 = vld [vmem:[%s1180_s3 + $0x20] sm:$0xf] }
  0x14   : > { %540 = vmatpush.bf16.msrb.mxu0 %v531_v9  ;;  %602 = vmatpush.bf16.msrb.mxu2 %v593_v11  ;;  %s346_s13 = sadd.s32 %s905_s8, %s1080_s15  ;;  %s906_s28 = smul.u32 3, %s1200_s7  ;;  %vm385_vm3 = vsmask.f32 7424  ;;  %v671_v42 = vsel %vm402_vm0, %v876_v34, 0 }
  0x15   : > { %649 = vmatpush.bf16.msrb.mxu3 %v640_v14  ;;  %571 = vmatpush.bf16.msrb.mxu1 %v562_v15  ;;  %s336_s9 = sadd.s32 %s1080_s15, %s903_s30  ;;  %s848_s19 = sshll.u32 %s346_s13, 2 }
  0x16   : > { %s847_s11 = sshll.u32 %s336_s9, 2  ;;  %s1109_s12 = scalar_lea.vmem %s1178_s1, %s848_s19 }
  0x17   : > { %s338_s17 = scalar_lea.vmem %s1177_s0, %s847_s11  ;;  %v880_v22 = vld [vmem:[%s1109_s12] sm:$0xff]  ;;  %v504_v25 = vld [vmem:[%s1109_s12 + $0x8] sm:$0x1]  ;;  %s357_s29 = sadd.s32 %s906_s28, %s1080_s15 }
  0x18   : > { %v894_v16 = vld [vmem:[%s338_s17] sm:$0xf0]  ;;  %v374_v17 = vld [vmem:[%s338_s17 + $0x8] sm:$0x1]  ;;  %v895_v18 = vld [vmem:[%s338_s17] sm:$0xe]  ;;  %863 = vmatmul.msk.bf16.vlgmr.msra.gmra.mxu3 %vm398_vm1, %v880_v22  ;;  %v512_v33 = vunpack.c.l.b16 %v504_v25 }
  0x19   : > { %v382_v19 = vunpack.c.l.b16 %v374_v17  ;;  %v896_v20 = vor.u32 %v895_v18, %v894_v16  ;;  %v883_v21 = vld [vmem:[%s338_s17] sm:$0xff]   ;;  %s849_s9 = sshll.u32 %s357_s29, 2  ;;  %s1202_s21 = smov (!%p363_p9, %s971_s21), 15 }
  0x1a   : > { %v387_v23 = vshrl.u32 %v883_v21, 16  ;;  %v389_v24 = vshll.u32 %v883_v21, 16  ;;  %855 = vmatmul.msk.bf16.vlgmr.msra.gmra.mxu1 %vm398_vm1, %v883_v21  ;;  %v897_v29 = vld [vmem:[%s1109_s12] sm:$0xf0]  ;;  %v898_v30 = vld [vmem:[%s1109_s12] sm:$0xe]  ;;  %s1127_s11 = scalar_lea.vmem %s1179_s2, %s849_s9  ;;  %v514_v44 = vpack.c.b16 %v512_v33, %v512_v33 }
  0x1b   : > { %v384_v26 = vpack.c.b16 %v382_v19, %v382_v19  ;;  %v446_v27 = vrot.slane %v896_v20, 1  ;;  %v899_v38 = vor.u32 %v898_v30, %v897_v29  ;;  %v887_v39 = vld [vmem:[%s1109_s12] sm:$0xff]   ;;  %v613_v41 = vld [vmem:[%s1127_s11 + $0x8] sm:$0x1]  ;;  %s850_s15 = sshll.u32 %s1202_s21, 1  ;;  %s851_s13 = sshll.u32 %s1196_s22, 5 }
  0x1c   : > { %v391_v28 = vrot.slane %v389_v24, 1  ;;  %v891_v40 = vld [vmem:[%s1127_s11] sm:$0xff]   ;;  %v621_v45 = vunpack.c.l.b16 %v613_v41  ;;  %v518_v48 = vshll.u32 %v887_v39, 16  ;;  %v556_v51 = vrot.slane %v514_v44, 1  ;;  %s367_s17 = sadd.s32 %s851_s13, %s850_s15 }
  0x1d   : > { %v447_v31 = vrot.slane %v384_v26, 1  ;;  %v394_v32 = vshll.u32 %v384_v26, 16  ;;  %v625_v46 = vshrl.u32 %v891_v40, 16  ;;  %v627_v47 = vshll.u32 %v891_v40, 16  ;;  %v881_v63 = vld [vmem:[%s1127_s11] sm:$0xff]  ;;  %s852_s20 = sshll.u32 %s367_s17, 3 }
  0x1e   : > { %v392_v35 = vor.u32 %v391_v28, %v387_v23  ;;  %v623_v49 = vpack.c.b16 %v621_v45, %v621_v45  ;;  %v555_v50 = vrot.slane %v899_v38, 1  ;;  %v516_v54 = vshrl.u32 %v887_v39, 16  ;;  %v900_v1 = vld [vmem:[%s1127_s11] sm:$0xf0]  ;;  %v901_v2 = vld [vmem:[%s1127_s11] sm:$0xe]  ;;  %s369_s12 = scalar_lea.vmem %s1183_s6, %s852_s20 }
  0x1f   : > { %v448_v36 = vsel %vm445_vm2, %v446_v27, %v447_v31  ;;  %v396_v37 = vrot.slane %v394_v32, 1  ;;  %v629_v52 = vrot.slane %v627_v47, 1  ;;  %v520_v56 = vrot.slane %v518_v48, 1  ;;  %v947_v33 = vld [vmem:[%s1181_s4] ss:$0 sm:$0xff] }
  0x20   : > { %857 = vmatmul.msk.bf16.vlgmr.msra.gmra.mxu2 %vm398_vm1, %v448_v36  ;;  %v632_v53 = vshll.u32 %v623_v49, 16  ;;  %v523_v57 = vshll.u32 %v514_v44, 16  ;;  %v557_v59 = vsel %vm445_vm2, %v555_v50, %v556_v51  ;;  %v902_v3 = vor.u32 %v901_v2, %v900_v1 }
  0x21   : > { %v397_v43 = vsel %vm385_vm3, %v392_v35, %v396_v37  ;;  %v630_v55 = vor.u32 %v629_v52, %v625_v46  ;;  %v521_v61 = vor.u32 %v520_v56, %v516_v54  ;;  %v665_v5 = vrot.slane %v623_v49, 1  ;;  %v948_v37 = vld [vmem:[%s1182_s5] ss:$0 sm:$0xff] }
  0x22   : > { %854 = vmatmul.msk.bf16.vlgmr.msra.gmra.mxu0 %vm398_vm1, %v397_v43  ;;  %v634_v58 = vrot.slane %v632_v53, 1  ;;  %v525_v62 = vrot.slane %v523_v57, 1  ;;  %v664_v4 = vrot.slane %v902_v3, 1 }
  0x23   : > { %680 = vmatpush.bf16.msra.mxu0 %v671_v42 }
  0x24   : > { %v635_v60 = vsel %vm385_vm3, %v630_v55, %v634_v58  ;;  %v526_v0 = vsel %vm385_vm3, %v521_v61, %v525_v62  ;;  %v666_v6 = vsel %vm445_vm2, %v664_v4, %v665_v5 }
  0x28   : > { %875 = vmatmul.msk.bf16.vlgmr.msrb.gmra.mxu3 %vm398_vm1, %v635_v60 }
  0x2a   : > { %867 = vmatmul.msk.bf16.vlgmr.msrb.gmra.mxu1 %vm398_vm1, %v557_v59 }
  0x30   : > { %873 = vmatmul.msk.bf16.vlgmr.msrb.gmra.mxu2 %vm398_vm1, %v881_v63 }
  0x32   : > { %865 = vmatmul.msk.bf16.vlgmr.msrb.gmra.mxu0 %vm398_vm1, %v526_v0 }
  0x42   : > { %877 = vmatmul.msk.bf16.vlgmr.msra.gmra.mxu0 %vm398_vm1, %v666_v6 }
  0x97   : > { %v434_v8 = vpop.f32.mrf.mxu1 }
  0x9b   : > { %v495_v10 = vpop.f32.mrf.mxu3 }
  0x9f   : > { %v415_v7 = vpop.f32.mrf.mxu0  ;;  %v436_v12 = vpop.f32.mrf.mxu1 }
  0xa0   : > { %v435_v13 = vadd.f32 %v434_v8, %v415_v7 }
  0xa3   : > { %v464_v9 = vpop.f32.mrf.mxu2  ;;  %v497_v16 = vpop.f32.mrf.mxu3 }
  0xa4   : > { %v469_v15 = vadd.f32 %v464_v9, %v435_v13 }
  0xa6   : > { %v500_v18 = vadd.f32 %v495_v10, %v469_v15 }
  0xa7   : > { %v417_v11 = vpop.f32.mrf.mxu0  ;;  %v573_v19 = vpop.f32.mrf.mxu1 }
  0xa8   : > { %v437_v20 = vadd.f32 %v436_v12, %v417_v11 }
  0xab   : > { %v466_v14 = vpop.f32.mrf.mxu2  ;;  %v651_v27 = vpop.f32.mrf.mxu3 }
  0xac   : > { %v470_v22 = vadd.f32 %v466_v14, %v437_v20 }
  0xae   : > { %v501_v26 = vadd.f32 %v497_v16, %v470_v22 }
  0xaf   : > { %v542_v17 = vpop.f32.mrf.mxu0  ;;  %v575_v30 = vpop.f32.mrf.mxu1 }
  0xb0   : > { %v547_v21 = vadd.f32 %v542_v17, %v500_v18 }
  0xb2   : > { %v578_v24 = vadd.f32 %v573_v19, %v547_v21 }
  0xb3   : > { %v604_v23 = vpop.f32.mrf.mxu2  ;;  %v653_v40 = vpop.f32.mrf.mxu3 }
  0xb4   : > { %v609_v28 = vadd.f32 %v604_v23, %v578_v24 }
  0xb6   : > { %v656_v31 = vadd.f32 %v651_v27, %v609_v28 }
  0xb7   : > { %v544_v25 = vpop.f32.mrf.mxu0 }
  0xb8   : > { %v548_v29 = vadd.f32 %v544_v25, %v501_v26 }
  0xba   : > { %v579_v32 = vadd.f32 %v575_v30, %v548_v29 }
  0xbb   : > { %v606_v34 = vpop.f32.mrf.mxu2 }
  0xbc   : > { %v610_v38 = vadd.f32 %v606_v34, %v579_v32 }
  0xbe   : > { %v657_v42 = vadd.f32 %v653_v40, %v610_v38 }
  0xbf   : > { %v682_v35 = vpop.f32.mrf.mxu0 }
  0xc0   : > { %v687_v36 = vadd.f32 %v682_v35, %v656_v31 }
  0xc2   : > { %v693_v39 = vmul.f32 %v947_v33, %v687_v36 }
  0xc4   : > { %v699_v41 = vadd.f32 %v948_v37, %v693_v39 }
  0xc6   : > { %v701_v43 = vmax.f32 %v699_v41, 0.0 }
  0xc7   : > { %v684_v44 = vpop.f32.mrf.mxu0 }
  0xc8   : > { %703 = vst.msk [vmem:[%s369_s12] sm:$0xff] %vm398_vm1, %v701_v43  ;;  %v688_v45 = vadd.f32 %v684_v44, %v657_v42 }
  0xca   : > { %v694_v46 = vmul.f32 %v947_v33, %v688_v45 }
  0xcc   : > { %v700_v47 = vadd.f32 %v948_v37, %v694_v46 }
  0xce   : > { %v702_v48 = vmax.f32 %v700_v47, 0.0 }
  0xd0   : > { %704 = vst.msk [vmem:[%s369_s12 + $0x8] sm:$0xff] %vm398_vm1, %v702_v48 }
  0xd1 PF: > { %s16_s25 = sadd.s32 1, %s987_s25   ;;  %s1185_s21 = smov %s979_s23 }
  0xd2   : > { %p13_p10 = scmp.ge.s32.totalorder %s16_s25, 34   ;;  %s1186_s22 = smov %s983_s24 }
  0xd3   : > { %s1187_s23 = smov %s1190_s26  ;;  %s1188_s24 = smov %s1194_s27 }
  0xd4   :  { %15 = sbr.rel (!%p13_p10) target bundleno = 3 (0x3), region = 88 }

// kernel: _lambda_.3
= control target key start
LH: loop header
LB: loop body
LE: loop exit
PB: predicated region body
PF: predicated region fallthrough
CT: control target
= control target key end

     0   :  { %s1198_s15 = smov 0   ;;  %s1200_s16 = smov 0   ;;  %s1479_s0 = inlined_call_operand.vmem [shape: bf16[512,32], index: 0, kind: input, shape index: {}]   ;;  %s1480_s1 = inlined_call_operand.vmem [shape: bf16[32,8], index: 1, kind: input, shape index: {}]   ;;  %s1481_s2 = inlined_call_operand.vmem [shape: f32[1,8], index: 2, kind: input, shape index: {}]   ;;  %s1482_s3 = inlined_call_operand.vmem [shape: f32[1,8], index: 3, kind: input, shape index: {}]   ;;  %s1483_s4 = inlined_call_operand.vmem [shape: f32[512,8], index: 4, kind: output, shape index: {}]  }
   0x1   :  { %s1202_s17 = smov 0  }
   0x2 LB: > { %s33_s18 = sadd.s32 1, %s1166_s16  ;;  %p1002_p0 = scmp.ge.s32.totalorder %s1170_s17, 1  ;;  %s1170_s17 = sphi %s1202_s17, %s14_s17   ;;  %s1166_s16 = sphi %s1200_s16, %s1485_s16   ;;  %s1162_s15 = sphi %s1198_s15, %s1484_s15  }
   0x3   : > { %p35_p1 = scmp.ge.s32.totalorder %s33_s18, 2  ;;  %p221_p2 = scmp.lt.s32.totalorder %s1170_s17, 3 }
   0x5   : > { %s1487_s18 = smov (%p35_p1, %s33_s18), 0  ;;  %p222_p3 = pnand %p1002_p0, %p221_p2 }
   0x6   : > { %s1003_s21 = sshll.u32 (!%p222_p3), %s1162_s15, 5 }
   0x7   : > { %225 = sbr.rel (%p222_p3) target bundleno = 228 (0xe4), region = 36  ;;  %p268_p4 = scmp.lt.s32.totalorder (!%p222_p3), %s1003_s21, 63 }
   0xc   : > { %v1114_v0 = vld [vmem:[%s1480_s1 + $0x8] sm:$0xff]  ;;  %v1113_v1 = vld [vmem:[%s1480_s1] sm:$0xff]  ;;  %s1489_s21 = smov (!%p268_p4, %s1003_s21), 63  ;;  %vm498_vm0 = vcmask 261120   ;;  %vm305_vm1 = vcmask 64512   ;;  %v1172_v10 = vmov 0.0  }
   0xd   : > { %553 = vmatpush.bf16.msra.mxu0 %v1114_v0  ;;  %1115 = vmatpush.bf16.msra.mxu1 %v1114_v0  ;;  %s1004_s24 = sshll.u32 %s1489_s21, 2  ;;  %306 = vst.msk [vmem:[#allocation2] sm:$0xff] %vm305_vm1, %v1172_v10  ;;  %v1299_v29 = vld [vmem:[%s1481_s2] ss:$0 sm:$0xff]  ;;  %s1006_s6 = sshll.u32 %s1489_s21, 3 }
   0xe   : > { %1116 = vmatpush.bf16.msra.mxu2 %v1114_v0  ;;  %1117 = vmatpush.bf16.msra.mxu3 %v1114_v0  ;;  %s1228_s27 = scalar_lea.vmem %s1479_s0, %s1004_s24  ;;  %307 = vst.msk [vmem:[#allocation2 + $0x8] sm:$0xff] %vm305_vm1, %v1172_v10  ;;  %v1304_v36 = vld [vmem:[%s1482_s3] ss:$0 sm:$0xff]  ;;  %s1317_s9 = scalar_lea.vmem %s1483_s4, %s1006_s6 }
   0xf   : > { %v1097_v2 = vld [vmem:[%s1228_s27] sm:$0xff]  ;;  %v1098_v6 = vld [vmem:[%s1228_s27 + $0x8] sm:$0xff]  ;;  %308 = vst.msk [vmem:[#allocation2 + $0x10] sm:$0xff] %vm305_vm1, %v1172_v10  ;;  %v1099_v11 = vld [vmem:[%s1228_s27 + $0x10] sm:$0xff] }
  0x10   : > { %v1101_v3 = vld [vmem:[%s1228_s27 + $0x20] sm:$0xff]  ;;  %v1102_v7 = vld [vmem:[%s1228_s27 + $0x28] sm:$0xff]  ;;  %309 = vst.msk [vmem:[#allocation2 + $0x18] sm:$0xff] %vm305_vm1, %v1172_v10  ;;  %v1103_v12 = vld [vmem:[%s1228_s27 + $0x30] sm:$0xff] }
  0x11   : > { %554 = vmatpush.bf16.msra.mxu0 %v1113_v1  ;;  %1118 = vmatpush.bf16.msra.mxu1 %v1113_v1  ;;  %v1105_v4 = vld [vmem:[%s1228_s27 + $0x40] sm:$0xff]  ;;  %v1106_v8 = vld [vmem:[%s1228_s27 + $0x48] sm:$0xff]  ;;  %310 = vst.msk [vmem:[#allocation2 + $0x20] sm:$0xff] %vm305_vm1, %v1172_v10  ;;  %v1107_v13 = vld [vmem:[%s1228_s27 + $0x50] sm:$0xff] }
  0x12   : > { %1119 = vmatpush.bf16.msra.mxu2 %v1113_v1  ;;  %1120 = vmatpush.bf16.msra.mxu3 %v1113_v1  ;;  %v1109_v5 = vld [vmem:[%s1228_s27 + $0x60] sm:$0xff]  ;;  %v1110_v9 = vld [vmem:[%s1228_s27 + $0x68] sm:$0xff]  ;;  %311 = vst.msk [vmem:[#allocation2 + $0x28] sm:$0xff] %vm305_vm1, %v1172_v10  ;;  %v1111_v14 = vld [vmem:[%s1228_s27 + $0x70] sm:$0xff] }
  0x13   : > { %312 = vst.msk [vmem:[#allocation2 + $0x30] sm:$0xff] %vm305_vm1, %v1172_v10  ;;  %v1100_v15 = vld [vmem:[%s1228_s27 + $0x18] sm:$0xff] }
  0x14   : > { %1079 = vmatmul.msk.bf16.vlgmr.msra.gmra.mxu0 %vm498_vm0, %v1097_v2  ;;  %1083 = vmatmul.msk.bf16.vlgmr.msra.gmra.mxu1 %vm498_vm0, %v1101_v3  ;;  %313 = vst.msk [vmem:[#allocation2 + $0x38] sm:$0xff] %vm305_vm1, %v1172_v10  ;;  %v1104_v16 = vld [vmem:[%s1228_s27 + $0x38] sm:$0xff]  ;;  %v338_v19 = vld [vmem:[#allocation2] sm:$0xff] }
  0x15   : > { %1087 = vmatmul.msk.bf16.vlgmr.msra.gmra.mxu2 %vm498_vm0, %v1105_v4  ;;  %1091 = vmatmul.msk.bf16.vlgmr.msra.gmra.mxu3 %vm498_vm0, %v1109_v5  ;;  %314 = vst.msk [vmem:[#allocation2 + $0x40] sm:$0xff] %vm305_vm1, %v1172_v10  ;;  %v1108_v17 = vld [vmem:[%s1228_s27 + $0x58] sm:$0xff]  ;;  %v339_v27 = vld [vmem:[#allocation2 + $0x8] sm:$0xff] }
  0x16   : > { %315 = vst.msk [vmem:[#allocation2 + $0x48] sm:$0xff] %vm305_vm1, %v1172_v10  ;;  %v1112_v18 = vld [vmem:[%s1228_s27 + $0x78] sm:$0xff]  ;;  %v340_v47 = vld [vmem:[#allocation2 + $0x10] sm:$0xff] }
  0x17   : > { %316 = vst.msk [vmem:[#allocation2 + $0x50] sm:$0xff] %vm305_vm1, %v1172_v10 }
  0x18   : > { %317 = vst.msk [vmem:[#allocation2 + $0x58] sm:$0xff] %vm305_vm1, %v1172_v10 }
  0x19   : > { %318 = vst.msk [vmem:[#allocation2 + $0x60] sm:$0xff] %vm305_vm1, %v1172_v10 }
  0x1a   : > { %319 = vst.msk [vmem:[#allocation2 + $0x68] sm:$0xff] %vm305_vm1, %v1172_v10 }
  0x1b   : > { %320 = vst.msk [vmem:[#allocation2 + $0x70] sm:$0xff] %vm305_vm1, %v1172_v10 }
  0x1c   : > { %321 = vst.msk [vmem:[#allocation2 + $0x78] sm:$0xff] %vm305_vm1, %v1172_v10  ;;  %v346_v20 = vld [vmem:[#allocation2 + $0x40] sm:$0xff] }
  0x1d   : > { %322 = vst.msk [vmem:[#allocation2 + $0x80] sm:$0xff] %vm305_vm1, %v1172_v10  ;;  %v347_v28 = vld [vmem:[#allocation2 + $0x48] sm:$0xff] }
  0x1e   : > { %323 = vst.msk [vmem:[#allocation2 + $0x88] sm:$0xff] %vm305_vm1, %v1172_v10  ;;  %v348_v51 = vld [vmem:[#allocation2 + $0x50] sm:$0xff] }
  0x1f   : > { %324 = vst.msk [vmem:[#allocation2 + $0x90] sm:$0xff] %vm305_vm1, %v1172_v10 }
  0x20   : > { %325 = vst.msk [vmem:[#allocation2 + $0x98] sm:$0xff] %vm305_vm1, %v1172_v10 }
  0x21   : > { %326 = vst.msk [vmem:[#allocation2 + $0xa0] sm:$0xff] %vm305_vm1, %v1172_v10 }
  0x22   : > { %327 = vst.msk [vmem:[#allocation2 + $0xa8] sm:$0xff] %vm305_vm1, %v1172_v10 }
  0x23   : > { %328 = vst.msk [vmem:[#allocation2 + $0xb0] sm:$0xff] %vm305_vm1, %v1172_v10 }
  0x24   : > { %1080 = vmatmul.msk.bf16.gmra.mxu0 %vm498_vm0, %v1098_v6  ;;  %1084 = vmatmul.msk.bf16.gmra.mxu1 %vm498_vm0, %v1102_v7  ;;  %329 = vst.msk [vmem:[#allocation2 + $0xb8] sm:$0xff] %vm305_vm1, %v1172_v10  ;;  %v354_v25 = vld [vmem:[#allocation2 + $0x80] sm:$0xff] }
  0x25   : > { %1088 = vmatmul.msk.bf16.gmra.mxu2 %vm498_vm0, %v1106_v8  ;;  %1092 = vmatmul.msk.bf16.gmra.mxu3 %vm498_vm0, %v1110_v9  ;;  %330 = vst.msk [vmem:[#allocation2 + $0xc0] sm:$0xff] %vm305_vm1, %v1172_v10  ;;  %v355_v44 = vld [vmem:[#allocation2 + $0x88] sm:$0xff] }
  0x26   : > { %331 = vst.msk [vmem:[#allocation2 + $0xc8] sm:$0xff] %vm305_vm1, %v1172_v10  ;;  %v356_v5 = vld [vmem:[#allocation2 + $0x90] sm:$0xff] }
  0x27   : > { %332 = vst.msk [vmem:[#allocation2 + $0xd0] sm:$0xff] %vm305_vm1, %v1172_v10 }
  0x28   : > { %333 = vst.msk [vmem:[#allocation2 + $0xd8] sm:$0xff] %vm305_vm1, %v1172_v10 }
  0x29   : > { %334 = vst.msk [vmem:[#allocation2 + $0xe0] sm:$0xff] %vm305_vm1, %v1172_v10 }
  0x2a   : > { %335 = vst.msk [vmem:[#allocation2 + $0xe8] sm:$0xff] %vm305_vm1, %v1172_v10 }
  0x2b   : > { %336 = vst.msk [vmem:[#allocation2 + $0xf0] sm:$0xff] %vm305_vm1, %v1172_v10 }
  0x2c   : > { %337 = vst.msk [vmem:[#allocation2 + $0xf8] sm:$0xff] %vm305_vm1, %v1172_v10  ;;  %v362_v26 = vld [vmem:[#allocation2 + $0xc0] sm:$0xff] }
  0x2d   : > { %v363_v45 = vld [vmem:[#allocation2 + $0xc8] sm:$0xff] }
  0x2e   : > { %v364_v8 = vld [vmem:[#allocation2 + $0xd0] sm:$0xff] }
  0x34   : > { %1081 = vmatmul.msk.bf16.gmra.mxu0 %vm498_vm0, %v1099_v11  ;;  %1085 = vmatmul.msk.bf16.gmra.mxu1 %vm498_vm0, %v1103_v12 }
  0x35   : > { %1089 = vmatmul.msk.bf16.gmra.mxu2 %vm498_vm0, %v1107_v13  ;;  %1093 = vmatmul.msk.bf16.gmra.mxu3 %vm498_vm0, %v1111_v14  ;;  %v341_v13 = vld [vmem:[#allocation2 + $0x18] sm:$0xff] }
  0x44   : > { %1082 = vmatmul.msk.bf16.gmra.mxu0 %vm498_vm0, %v1100_v15  ;;  %1086 = vmatmul.msk.bf16.gmra.mxu1 %vm498_vm0, %v1104_v16 }
  0x45   : > { %1090 = vmatmul.msk.bf16.gmra.mxu2 %vm498_vm0, %v1108_v17  ;;  %1094 = vmatmul.msk.bf16.gmra.mxu3 %vm498_vm0, %v1112_v18  ;;  %v349_v17 = vld [vmem:[#allocation2 + $0x58] sm:$0xff] }
  0x91   : > { %v556_v21 = vpop.f32.mrf.mxu0  ;;  %v576_v22 = vpop.f32.mrf.mxu1 }
  0x92   : > { %v636_v23 = vadd.f32 %v556_v21, %v338_v19  ;;  %v644_v24 = vadd.f32 %v576_v22, %v346_v20 }
  0x94   : > { %669 = vst.msk [vmem:[#allocation2] sm:$0xff] %vm305_vm1, %v636_v23 }
  0x95   : > { %677 = vst.msk [vmem:[#allocation2 + $0x40] sm:$0xff] %vm305_vm1, %v644_v24 }
  0x98   : > { %v596_v30 = vpop.f32.mrf.mxu2  ;;  %v616_v31 = vpop.f32.mrf.mxu3 }
  0x99   : > { %v652_v32 = vadd.f32 %v596_v30, %v354_v25  ;;  %v660_v33 = vadd.f32 %v616_v31, %v362_v26  ;;  %v558_v34 = vpop.f32.mrf.mxu0  ;;  %v578_v35 = vpop.f32.mrf.mxu1 }
  0x9a   : > { %v637_v37 = vadd.f32 %v558_v34, %v339_v27  ;;  %v645_v38 = vadd.f32 %v578_v35, %v347_v28  ;;  %v357_v34 = vld [vmem:[#allocation2 + $0x98] sm:$0xff] }
  0x9b   : > { %v704_v39 = vld [vmem:[#allocation2] sm:$0xff]  ;;  %685 = vst.msk [vmem:[#allocation2 + $0x80] sm:$0xff] %vm305_vm1, %v652_v32 }
  0x9c   : > { %v740_v40 = vmul.f32 %v1299_v29, %v704_v39  ;;  %v712_v41 = vld [vmem:[#allocation2 + $0x40] sm:$0xff]  ;;  %693 = vst.msk [vmem:[#allocation2 + $0xc0] sm:$0xff] %vm305_vm1, %v660_v33  ;;  %v365_v39 = vld [vmem:[#allocation2 + $0xd8] sm:$0xff] }
  0x9d   : > { %v748_v42 = vmul.f32 %v1299_v29, %v712_v41  ;;  %670 = vst.msk [vmem:[#allocation2 + $0x8] sm:$0xff] %vm305_vm1, %v637_v37 }
  0x9e   : > { %v776_v43 = vadd.f32 %v1304_v36, %v740_v40  ;;  %678 = vst.msk [vmem:[#allocation2 + $0x48] sm:$0xff] %vm305_vm1, %v645_v38 }
  0x9f   : > { %v784_v46 = vadd.f32 %v1304_v36, %v748_v42 }
  0xa0   : > { %v808_v48 = vmax.f32 %v776_v43, 0.0  ;;  %v598_v49 = vpop.f32.mrf.mxu2  ;;  %v618_v50 = vpop.f32.mrf.mxu3  ;;  %v342_v43 = vld [vmem:[#allocation2 + $0x20] sm:$0xff] }
  0xa1   : > { %v816_v52 = vmax.f32 %v784_v46, 0.0  ;;  %v653_v53 = vadd.f32 %v598_v49, %v355_v44  ;;  %v661_v54 = vadd.f32 %v618_v50, %v363_v45  ;;  %v561_v55 = vpop.f32.mrf.mxu0  ;;  %v581_v56 = vpop.f32.mrf.mxu1 }
  0xa2   : > { %840 = vst.msk [vmem:[%s1317_s9] sm:$0xff] %vm305_vm1, %v808_v48  ;;  %v720_v57 = vld [vmem:[#allocation2 + $0x80] sm:$0xff]  ;;  %v638_v58 = vadd.f32 %v561_v55, %v340_v47  ;;  %v646_v61 = vadd.f32 %v581_v56, %v348_v51 }
  0xa3   : > { %848 = vst.msk [vmem:[%s1317_s9 + $0x40] sm:$0xff] %vm305_vm1, %v816_v52  ;;  %v756_v59 = vmul.f32 %v1299_v29, %v720_v57  ;;  %v728_v60 = vld [vmem:[#allocation2 + $0xc0] sm:$0xff] }
  0xa4   : > { %v764_v62 = vmul.f32 %v1299_v29, %v728_v60  ;;  %v705_v63 = vld [vmem:[#allocation2 + $0x8] sm:$0xff]  ;;  %686 = vst.msk [vmem:[#allocation2 + $0x88] sm:$0xff] %vm305_vm1, %v653_v53  ;;  %v350_v48 = vld [vmem:[#allocation2 + $0x60] sm:$0xff] }
  0xa5   : > { %v792_v0 = vadd.f32 %v1304_v36, %v756_v59  ;;  %v741_v1 = vmul.f32 %v1299_v29, %v705_v63  ;;  %v713_v2 = vld [vmem:[#allocation2 + $0x48] sm:$0xff]  ;;  %694 = vst.msk [vmem:[#allocation2 + $0xc8] sm:$0xff] %vm305_vm1, %v661_v54  ;;  %v358_v63 = vld [vmem:[#allocation2 + $0xa0] sm:$0xff] }
  0xa6   : > { %v800_v3 = vadd.f32 %v1304_v36, %v764_v62  ;;  %v749_v4 = vmul.f32 %v1299_v29, %v713_v2  ;;  %671 = vst.msk [vmem:[#allocation2 + $0x10] sm:$0xff] %vm305_vm1, %v638_v58 }
  0xa7   : > { %v824_v6 = vmax.f32 %v792_v0, 0.0  ;;  %v777_v7 = vadd.f32 %v1304_v36, %v741_v1  ;;  %679 = vst.msk [vmem:[#allocation2 + $0x50] sm:$0xff] %vm305_vm1, %v646_v61 }
  0xa8   : > { %v832_v9 = vmax.f32 %v800_v3, 0.0  ;;  %v785_v10 = vadd.f32 %v1304_v36, %v749_v4  ;;  %v601_v11 = vpop.f32.mrf.mxu2  ;;  %v621_v12 = vpop.f32.mrf.mxu3  ;;  %v366_v4 = vld [vmem:[#allocation2 + $0xe0] sm:$0xff] }
  0xa9   : > { %856 = vst.msk [vmem:[%s1317_s9 + $0x80] sm:$0xff] %vm305_vm1, %v824_v6  ;;  %v809_v14 = vmax.f32 %v777_v7, 0.0  ;;  %v654_v15 = vadd.f32 %v601_v11, %v356_v5  ;;  %v563_v16 = vpop.f32.mrf.mxu0  ;;  %v583_v18 = vpop.f32.mrf.mxu1  ;;  %v662_v20 = vadd.f32 %v621_v12, %v364_v8  ;;  %v351_v12 = vld [vmem:[#allocation2 + $0x68] sm:$0xff] }
  0xaa   : > { %864 = vst.msk [vmem:[%s1317_s9 + $0xc0] sm:$0xff] %vm305_vm1, %v832_v9  ;;  %v817_v19 = vmax.f32 %v785_v10, 0.0  ;;  %v639_v22 = vadd.f32 %v563_v16, %v341_v13  ;;  %v647_v25 = vadd.f32 %v583_v18, %v349_v17  ;;  %v343_v9 = vld [vmem:[#allocation2 + $0x28] sm:$0xff] }
  0xab   : > { %841 = vst.msk [vmem:[%s1317_s9 + $0x8] sm:$0xff] %vm305_vm1, %v809_v14  ;;  %v721_v21 = vld [vmem:[#allocation2 + $0x88] sm:$0xff] }
  0xac   : > { %849 = vst.msk [vmem:[%s1317_s9 + $0x48] sm:$0xff] %vm305_vm1, %v817_v19  ;;  %v757_v23 = vmul.f32 %v1299_v29, %v721_v21  ;;  %v729_v24 = vld [vmem:[#allocation2 + $0xc8] sm:$0xff] }
  0xad   : > { %v765_v26 = vmul.f32 %v1299_v29, %v729_v24  ;;  %v706_v27 = vld [vmem:[#allocation2 + $0x10] sm:$0xff]  ;;  %687 = vst.msk [vmem:[#allocation2 + $0x90] sm:$0xff] %vm305_vm1, %v654_v15 }
  0xae   : > { %v793_v28 = vadd.f32 %v1304_v36, %v757_v23  ;;  %v742_v30 = vmul.f32 %v1299_v29, %v706_v27  ;;  %v714_v31 = vld [vmem:[#allocation2 + $0x50] sm:$0xff]  ;;  %695 = vst.msk [vmem:[#allocation2 + $0xd0] sm:$0xff] %vm305_vm1, %v662_v20  ;;  %v359_v20 = vld [vmem:[#allocation2 + $0xa8] sm:$0xff] }
  0xaf   : > { %v801_v32 = vadd.f32 %v1304_v36, %v765_v26  ;;  %v750_v33 = vmul.f32 %v1299_v29, %v714_v31  ;;  %672 = vst.msk [vmem:[#allocation2 + $0x18] sm:$0xff] %vm305_vm1, %v639_v22 }
  0xb0   : > { %v825_v35 = vmax.f32 %v793_v28, 0.0  ;;  %v778_v37 = vadd.f32 %v1304_v36, %v742_v30  ;;  %680 = vst.msk [vmem:[#allocation2 + $0x58] sm:$0xff] %vm305_vm1, %v647_v25  ;;  %v603_v38 = vpop.f32.mrf.mxu2  ;;  %v623_v40 = vpop.f32.mrf.mxu3 }
  0xb1   : > { %v833_v41 = vmax.f32 %v801_v32, 0.0  ;;  %v786_v42 = vadd.f32 %v1304_v36, %v750_v33  ;;  %v566_v44 = vpop.f32.mrf.mxu0  ;;  %v586_v45 = vpop.f32.mrf.mxu1  ;;  %v655_v47 = vadd.f32 %v603_v38, %v357_v34  ;;  %v663_v50 = vadd.f32 %v623_v40, %v365_v39  ;;  %v367_v32 = vld [vmem:[#allocation2 + $0xe8] sm:$0xff] }
  0xb2   : > { %857 = vst.msk [vmem:[%s1317_s9 + $0x88] sm:$0xff] %vm305_vm1, %v825_v35  ;;  %v810_v46 = vmax.f32 %v778_v37, 0.0  ;;  %v640_v52 = vadd.f32 %v566_v44, %v342_v43  ;;  %v648_v55 = vadd.f32 %v586_v45, %v350_v48  ;;  %v344_v37 = vld [vmem:[#allocation2 + $0x30] sm:$0xff] }
  0xb3   : > { %865 = vst.msk [vmem:[%s1317_s9 + $0xc8] sm:$0xff] %vm305_vm1, %v833_v41  ;;  %v818_v49 = vmax.f32 %v786_v42, 0.0  ;;  %v352_v41 = vld [vmem:[#allocation2 + $0x70] sm:$0xff] }
  0xb4   : > { %842 = vst.msk [vmem:[%s1317_s9 + $0x10] sm:$0xff] %vm305_vm1, %v810_v46  ;;  %v722_v51 = vld [vmem:[#allocation2 + $0x90] sm:$0xff] }
  0xb5   : > { %850 = vst.msk [vmem:[%s1317_s9 + $0x50] sm:$0xff] %vm305_vm1, %v818_v49  ;;  %v758_v53 = vmul.f32 %v1299_v29, %v722_v51  ;;  %v730_v54 = vld [vmem:[#allocation2 + $0xd0] sm:$0xff] }
  0xb6   : > { %v766_v56 = vmul.f32 %v1299_v29, %v730_v54  ;;  %v707_v57 = vld [vmem:[#allocation2 + $0x18] sm:$0xff]  ;;  %688 = vst.msk [vmem:[#allocation2 + $0x98] sm:$0xff] %vm305_vm1, %v655_v47  ;;  %v360_v48 = vld [vmem:[#allocation2 + $0xb0] sm:$0xff] }
  0xb7   : > { %v794_v58 = vadd.f32 %v1304_v36, %v758_v53  ;;  %v743_v59 = vmul.f32 %v1299_v29, %v707_v57  ;;  %v715_v60 = vld [vmem:[#allocation2 + $0x58] sm:$0xff]  ;;  %696 = vst.msk [vmem:[#allocation2 + $0xd8] sm:$0xff] %vm305_vm1, %v663_v50  ;;  %v368_v49 = vld [vmem:[#allocation2 + $0xf0] sm:$0xff] }
  0xb8   : > { %v802_v61 = vadd.f32 %v1304_v36, %v766_v56  ;;  %v751_v62 = vmul.f32 %v1299_v29, %v715_v60  ;;  %673 = vst.msk [vmem:[#allocation2 + $0x20] sm:$0xff] %vm305_vm1, %v640_v52  ;;  %v606_v0 = vpop.f32.mrf.mxu2  ;;  %v626_v1 = vpop.f32.mrf.mxu3 }
  0xb9   : > { %v826_v2 = vmax.f32 %v794_v58, 0.0  ;;  %v779_v3 = vadd.f32 %v1304_v36, %v743_v59  ;;  %681 = vst.msk [vmem:[#allocation2 + $0x60] sm:$0xff] %vm305_vm1, %v648_v55  ;;  %v568_v5 = vpop.f32.mrf.mxu0  ;;  %v588_v6 = vpop.f32.mrf.mxu1  ;;  %v656_v11 = vadd.f32 %v606_v0, %v358_v63  ;;  %v664_v14 = vadd.f32 %v626_v1, %v366_v4 }
  0xba   : > { %v834_v7 = vmax.f32 %v802_v61, 0.0  ;;  %v787_v8 = vadd.f32 %v1304_v36, %v751_v62  ;;  %v641_v16 = vadd.f32 %v568_v5, %v343_v9  ;;  %v649_v19 = vadd.f32 %v588_v6, %v351_v12 }
  0xbb   : > { %858 = vst.msk [vmem:[%s1317_s9 + $0x90] sm:$0xff] %vm305_vm1, %v826_v2  ;;  %v811_v10 = vmax.f32 %v779_v3, 0.0  ;;  %v345_v3 = vld [vmem:[#allocation2 + $0x38] sm:$0xff] }
  0xbc   : > { %866 = vst.msk [vmem:[%s1317_s9 + $0xd0] sm:$0xff] %vm305_vm1, %v834_v7  ;;  %v819_v13 = vmax.f32 %v787_v8, 0.0  ;;  %v353_v7 = vld [vmem:[#allocation2 + $0x78] sm:$0xff] }
  0xbd   : > { %843 = vst.msk [vmem:[%s1317_s9 + $0x18] sm:$0xff] %vm305_vm1, %v811_v10  ;;  %v723_v15 = vld [vmem:[#allocation2 + $0x98] sm:$0xff] }
  0xbe   : > { %851 = vst.msk [vmem:[%s1317_s9 + $0x58] sm:$0xff] %vm305_vm1, %v819_v13  ;;  %v759_v17 = vmul.f32 %v1299_v29, %v723_v15  ;;  %v731_v18 = vld [vmem:[#allocation2 + $0xd8] sm:$0xff] }
  0xbf   : > { %v767_v21 = vmul.f32 %v1299_v29, %v731_v18  ;;  %v708_v22 = vld [vmem:[#allocation2 + $0x20] sm:$0xff]  ;;  %689 = vst.msk [vmem:[#allocation2 + $0xa0] sm:$0xff] %vm305_vm1, %v656_v11  ;;  %v361_v13 = vld [vmem:[#allocation2 + $0xb8] sm:$0xff] }
  0xc0   : > { %v795_v23 = vadd.f32 %v1304_v36, %v759_v17  ;;  %v744_v24 = vmul.f32 %v1299_v29, %v708_v22  ;;  %v716_v25 = vld [vmem:[#allocation2 + $0x60] sm:$0xff]  ;;  %697 = vst.msk [vmem:[#allocation2 + $0xe0] sm:$0xff] %vm305_vm1, %v664_v14  ;;  %v608_v26 = vpop.f32.mrf.mxu2  ;;  %v628_v27 = vpop.f32.mrf.mxu3  ;;  %v369_v14 = vld [vmem:[#allocation2 + $0xf8] sm:$0xff] }
  0xc1   : > { %v803_v28 = vadd.f32 %v1304_v36, %v767_v21  ;;  %v752_v30 = vmul.f32 %v1299_v29, %v716_v25  ;;  %674 = vst.msk [vmem:[#allocation2 + $0x28] sm:$0xff] %vm305_vm1, %v641_v16  ;;  %v657_v31 = vadd.f32 %v608_v26, %v359_v20  ;;  %v571_v33 = vpop.f32.mrf.mxu0  ;;  %v591_v38 = vpop.f32.mrf.mxu1  ;;  %v665_v43 = vadd.f32 %v628_v27, %v367_v32 }
  0xc2   : > { %v827_v34 = vmax.f32 %v795_v23, 0.0  ;;  %v780_v35 = vadd.f32 %v1304_v36, %v744_v24  ;;  %682 = vst.msk [vmem:[#allocation2 + $0x68] sm:$0xff] %vm305_vm1, %v649_v19  ;;  %v642_v45 = vadd.f32 %v571_v33, %v344_v37  ;;  %v650_v47 = vadd.f32 %v591_v38, %v352_v41 }
  0xc3   : > { %v835_v39 = vmax.f32 %v803_v28, 0.0  ;;  %v788_v40 = vadd.f32 %v1304_v36, %v752_v30  ;;  %690 = vst.msk [vmem:[#allocation2 + $0xa8] sm:$0xff] %vm305_vm1, %v657_v31 }
  0xc4   : > { %859 = vst.msk [vmem:[%s1317_s9 + $0x98] sm:$0xff] %vm305_vm1, %v827_v34  ;;  %v812_v42 = vmax.f32 %v780_v35, 0.0 }
  0xc5   : > { %867 = vst.msk [vmem:[%s1317_s9 + $0xd8] sm:$0xff] %vm305_vm1, %v835_v39  ;;  %v820_v44 = vmax.f32 %v788_v40, 0.0 }
  0xc6   : > { %844 = vst.msk [vmem:[%s1317_s9 + $0x20] sm:$0xff] %vm305_vm1, %v812_v42  ;;  %v724_v46 = vld [vmem:[#allocation2 + $0xa0] sm:$0xff] }
  0xc7   : > { %852 = vst.msk [vmem:[%s1317_s9 + $0x60] sm:$0xff] %vm305_vm1, %v820_v44  ;;  %v760_v50 = vmul.f32 %v1299_v29, %v724_v46  ;;  %v732_v51 = vld [vmem:[#allocation2 + $0xe0] sm:$0xff] }
  0xc8   : > { %v768_v52 = vmul.f32 %v1299_v29, %v732_v51  ;;  %v709_v53 = vld [vmem:[#allocation2 + $0x28] sm:$0xff]  ;;  %698 = vst.msk [vmem:[#allocation2 + $0xe8] sm:$0xff] %vm305_vm1, %v665_v43  ;;  %v611_v54 = vpop.f32.mrf.mxu2  ;;  %v631_v55 = vpop.f32.mrf.mxu3 }
  0xc9   : > { %v796_v56 = vadd.f32 %v1304_v36, %v760_v50  ;;  %v745_v57 = vmul.f32 %v1299_v29, %v709_v53  ;;  %v717_v58 = vld [vmem:[#allocation2 + $0x68] sm:$0xff]  ;;  %675 = vst.msk [vmem:[#allocation2 + $0x30] sm:$0xff] %vm305_vm1, %v642_v45  ;;  %v658_v59 = vadd.f32 %v611_v54, %v360_v48  ;;  %v666_v60 = vadd.f32 %v631_v55, %v368_v49  ;;  %v573_v4 = vpop.f32.mrf.mxu0  ;;  %v593_v8 = vpop.f32.mrf.mxu1 }
  0xca   : > { %v804_v61 = vadd.f32 %v1304_v36, %v768_v52  ;;  %v753_v62 = vmul.f32 %v1299_v29, %v717_v58  ;;  %v725_v63 = vld [vmem:[#allocation2 + $0xa8] sm:$0xff]  ;;  %683 = vst.msk [vmem:[#allocation2 + $0x70] sm:$0xff] %vm305_vm1, %v650_v47  ;;  %v643_v12 = vadd.f32 %v573_v4, %v345_v3  ;;  %v651_v17 = vadd.f32 %v593_v8, %v353_v7 }
  0xcb   : > { %v828_v0 = vmax.f32 %v796_v56, 0.0  ;;  %v781_v1 = vadd.f32 %v1304_v36, %v745_v57  ;;  %v761_v2 = vmul.f32 %v1299_v29, %v725_v63  ;;  %691 = vst.msk [vmem:[#allocation2 + $0xb0] sm:$0xff] %vm305_vm1, %v658_v59 }
  0xcc   : > { %v836_v5 = vmax.f32 %v804_v61, 0.0  ;;  %v789_v6 = vadd.f32 %v1304_v36, %v753_v62  ;;  %699 = vst.msk [vmem:[#allocation2 + $0xf0] sm:$0xff] %vm305_vm1, %v666_v60 }
  0xcd   : > { %860 = vst.msk [vmem:[%s1317_s9 + $0xa0] sm:$0xff] %vm305_vm1, %v828_v0  ;;  %v813_v9 = vmax.f32 %v781_v1, 0.0  ;;  %v797_v10 = vadd.f32 %v1304_v36, %v761_v2 }
  0xce   : > { %868 = vst.msk [vmem:[%s1317_s9 + $0xe0] sm:$0xff] %vm305_vm1, %v836_v5  ;;  %v821_v11 = vmax.f32 %v789_v6, 0.0 }
  0xcf   : > { %845 = vst.msk [vmem:[%s1317_s9 + $0x28] sm:$0xff] %vm305_vm1, %v813_v9  ;;  %v829_v15 = vmax.f32 %v797_v10, 0.0  ;;  %v733_v16 = vld [vmem:[#allocation2 + $0xe8] sm:$0xff] }
  0xd0   : > { %853 = vst.msk [vmem:[%s1317_s9 + $0x68] sm:$0xff] %vm305_vm1, %v821_v11  ;;  %v769_v18 = vmul.f32 %v1299_v29, %v733_v16  ;;  %v710_v19 = vld [vmem:[#allocation2 + $0x30] sm:$0xff]  ;;  %v613_v20 = vpop.f32.mrf.mxu2  ;;  %v633_v21 = vpop.f32.mrf.mxu3 }
  0xd1   : > { %861 = vst.msk [vmem:[%s1317_s9 + $0xa8] sm:$0xff] %vm305_vm1, %v829_v15  ;;  %v746_v22 = vmul.f32 %v1299_v29, %v710_v19  ;;  %v718_v23 = vld [vmem:[#allocation2 + $0x70] sm:$0xff]  ;;  %v659_v24 = vadd.f32 %v613_v20, %v361_v13  ;;  %v667_v25 = vadd.f32 %v633_v21, %v369_v14 }
  0xd2   : > { %v805_v26 = vadd.f32 %v1304_v36, %v769_v18  ;;  %v754_v27 = vmul.f32 %v1299_v29, %v718_v23  ;;  %v726_v28 = vld [vmem:[#allocation2 + $0xb0] sm:$0xff]  ;;  %676 = vst.msk [vmem:[#allocation2 + $0x38] sm:$0xff] %vm305_vm1, %v643_v12 }
  0xd3   : > { %v782_v30 = vadd.f32 %v1304_v36, %v746_v22  ;;  %v762_v31 = vmul.f32 %v1299_v29, %v726_v28  ;;  %v734_v32 = vld [vmem:[#allocation2 + $0xf0] sm:$0xff]  ;;  %684 = vst.msk [vmem:[#allocation2 + $0x78] sm:$0xff] %vm305_vm1, %v651_v17 }
  0xd4   : > { %v837_v33 = vmax.f32 %v805_v26, 0.0  ;;  %v790_v34 = vadd.f32 %v1304_v36, %v754_v27  ;;  %v770_v35 = vmul.f32 %v1299_v29, %v734_v32  ;;  %692 = vst.msk [vmem:[#allocation2 + $0xb8] sm:$0xff] %vm305_vm1, %v659_v24 }
  0xd5   : > { %v814_v37 = vmax.f32 %v782_v30, 0.0  ;;  %v798_v38 = vadd.f32 %v1304_v36, %v762_v31  ;;  %700 = vst.msk [vmem:[#allocation2 + $0xf8] sm:$0xff] %vm305_vm1, %v667_v25 }
  0xd6   : > { %869 = vst.msk [vmem:[%s1317_s9 + $0xe8] sm:$0xff] %vm305_vm1, %v837_v33  ;;  %v822_v39 = vmax.f32 %v790_v34, 0.0  ;;  %v806_v40 = vadd.f32 %v1304_v36, %v770_v35 }
  0xd7   : > { %846 = vst.msk [vmem:[%s1317_s9 + $0x30] sm:$0xff] %vm305_vm1, %v814_v37  ;;  %v830_v41 = vmax.f32 %v798_v38, 0.0 }
  0xd8   : > { %854 = vst.msk [vmem:[%s1317_s9 + $0x70] sm:$0xff] %vm305_vm1, %v822_v39  ;;  %v838_v42 = vmax.f32 %v806_v40, 0.0 }
  0xd9   : > { %862 = vst.msk [vmem:[%s1317_s9 + $0xb0] sm:$0xff] %vm305_vm1, %v830_v41  ;;  %v711_v43 = vld [vmem:[#allocation2 + $0x38] sm:$0xff] }
  0xda   : > { %870 = vst.msk [vmem:[%s1317_s9 + $0xf0] sm:$0xff] %vm305_vm1, %v838_v42  ;;  %v747_v44 = vmul.f32 %v1299_v29, %v711_v43  ;;  %v719_v45 = vld [vmem:[#allocation2 + $0x78] sm:$0xff] }
  0xdb   : > { %v755_v46 = vmul.f32 %v1299_v29, %v719_v45  ;;  %v727_v47 = vld [vmem:[#allocation2 + $0xb8] sm:$0xff] }
  0xdc   : > { %v783_v48 = vadd.f32 %v1304_v36, %v747_v44  ;;  %v763_v49 = vmul.f32 %v1299_v29, %v727_v47  ;;  %v735_v50 = vld [vmem:[#allocation2 + $0xf8] sm:$0xff] }
  0xdd   : > { %v791_v51 = vadd.f32 %v1304_v36, %v755_v46  ;;  %v771_v52 = vmul.f32 %v1299_v29, %v735_v50 }
  0xde   : > { %v815_v53 = vmax.f32 %v783_v48, 0.0  ;;  %v799_v54 = vadd.f32 %v1304_v36, %v763_v49 }
  0xdf   : > { %v823_v55 = vmax.f32 %v791_v51, 0.0  ;;  %v807_v56 = vadd.f32 %v1304_v36, %v771_v52 }
  0xe0   : > { %847 = vst.msk [vmem:[%s1317_s9 + $0x38] sm:$0xff] %vm305_vm1, %v815_v53  ;;  %v831_v57 = vmax.f32 %v799_v54, 0.0 }
  0xe1   : > { %855 = vst.msk [vmem:[%s1317_s9 + $0x78] sm:$0xff] %vm305_vm1, %v823_v55  ;;  %v839_v58 = vmax.f32 %v807_v56, 0.0 }
  0xe2   : > { %863 = vst.msk [vmem:[%s1317_s9 + $0xb8] sm:$0xff] %vm305_vm1, %v831_v57 }
  0xe3   : > { %871 = vst.msk [vmem:[%s1317_s9 + $0xf8] sm:$0xff] %vm305_vm1, %v839_v58 }
  0xe4 PF: > { %s14_s17 = sadd.s32 1, %s1170_s17   ;;  %s1484_s15 = smov %s1166_s16 }
  0xe5   : > { %p11_p5 = scmp.ge.s32.totalorder %s14_s17, 4   ;;  %s1485_s16 = smov %s1487_s18 }
  0xe7   :  { %13 = sbr.rel (!%p11_p5) target bundleno = 2 (0x2), region = 83 }

// kernel: _lambda_.5
= control target key start
LH: loop header
LB: loop body
LE: loop exit
PB: predicated region body
PF: predicated region fallthrough
CT: control target
= control target key end

     0   :  { %10 = vsyncpa [#allocation4], 0  ;;  %s1798_s0 = inlined_call_operand.vmem [shape: bf16[512,8], index: 0, kind: input, shape index: {}]   ;;  %s1799_s1 = inlined_call_operand.vmem [shape: bf16[8,32], index: 1, kind: input, shape index: {}]   ;;  %s1800_s2 = inlined_call_operand.vmem [shape: f32[1,32], index: 2, kind: input, shape index: {}]   ;;  %s1801_s3 = inlined_call_operand.vmem [shape: f32[1,32], index: 3, kind: input, shape index: {}]   ;;  %s1802_s4 = inlined_call_operand.vmem [shape: f32[512,32], index: 4, kind: input, shape index: {}]   ;;  %s1803_s5 = inlined_call_operand.hbm [shape: f32[512,32], index: 5, kind: output, shape index: {}]  }
   0x1   :  { %12 = vsyncpa [#allocation4 + $0x1], 0  ;;  %s1415_s18 = smov 0   ;;  %s1417_s19 = smov 0  }
   0x2   :  { %s1419_s20 = smov 0   ;;  %s1421_s21 = smov 0  }
   0x3   :  { %s1423_s22 = smov 0   ;;  %s1425_s23 = smov 0  }
   0x4 LB: > { %s1124_s24 = sadd.s32 4294967295, %s1380_s23   ;;  %s1125_s25 = sadd.s32 4294967294, %s1380_s23   ;;  %s1380_s23 = sphi %s1425_s23, %s18_s23   ;;  %s1376_s22 = sphi %s1423_s22, %s1810_s22   ;;  %s1372_s21 = sphi %s1421_s21, %s1809_s21   ;;  %s1368_s20 = sphi %s1419_s20, %s1808_s20   ;;  %s1364_s19 = sphi %s1417_s19, %s1807_s19   ;;  %s1360_s18 = sphi %s1415_s18, %s1806_s18  }
   0x5   : > { %s37_s26 = sadd.s32 1, %s1376_s22  ;;  %s182_s27 = sadd.s32 1, %s1368_s20 }
   0x6   : > { %p39_p0 = scmp.ge.s32.totalorder %s37_s26, 2  ;;  %p192_p1 = scmp.ne.s32.totalorder %s1368_s20, %s1364_s19 }
   0x7   : > { %p193_p2 = scmp.eq.s32.totalorder %s1124_s24, 1  ;;  %p198_p3 = scmp.ne.s32.totalorder %s1364_s19, %s1360_s18 }
   0x8   : > { %s1812_s26 = smov (%p39_p0, %s37_s26), 0  ;;  %p199_p5 = scmp.eq.s32.totalorder %s1125_s25, 1 }
   0x9   : > { %p1455_p4 = por %p193_p2, %p192_p1  ;;  %s177_s29 = ssub.s32 %s1376_s22, %s1812_s26 }
   0xa   : > { %p1131_p6 = scmp.ge.s32.totalorder %s1380_s23, 1  ;;  %p180_p7 = scmp.eq.s32.totalorder %s177_s29, 0 }
   0xb   : > { %p1462_p8 = por %p199_p5, %p198_p3  ;;  %p263_p9 = scmp.lt.s32.totalorder %s1380_s23, 3 }
   0xc   : > { %s1468_s6 = scalar_select %p180_p7, %s1368_s20, %s182_s27  }
   0xd   : > { %p264_p10 = pnand %p1131_p6, %p263_p9 }
   0xe   : > { %s1133_s9 = sshll.u32 (!%p264_p10), %s1372_s21, 5  ;;  %s312_s7 = sand.u32 (!%p264_p10), 1, %s1364_s19  }
   0xf   : > { %267 = sbr.rel (%p264_p10) target bundleno = 238 (0xee), region = 40  ;;  %p316_p11 = scmp.lt.s32.totalorder (!%p264_p10), %s1133_s9, 63 }
  0x10   : > { %s1132_s8 = sshll.u32 (!%p264_p10), %s312_s7, 8  ;;  %s973_s15 = scalar_lea.sflag (!%p264_p10), [#allocation4], %s312_s7 }
  0x11   : > { %s1322_s27 = scalar_lea.hbm (!%p264_p10), %s1803_s5, 512 }
  0x14   : > { %v449_v0 = vld [vmem:[%s1799_s1] sm:$0xf]  ;;  %vm579_vm0 = vcmask 1043456   ;;  %s1814_s9 = smov (!%p316_p11, %s1133_s9), 63  ;;  %vm530_vm1 = vcmask 64512   ;;  %vm352_vm2 = vcmask 261120  }
  0x15   : > { %v581_v1 = vsel %vm579_vm0, %v449_v0, 0  ;;  %s1134_s10 = sshll.u32 %s1814_s9, 2  ;;  %v1382_v10 = vmov 0.0   ;;  %s1136_s14 = sshll.u32 %s1814_s9, 3  ;;  %v1552_v29 = vld [vmem:[%s1800_s2] ss:$0 sm:$0xff] }
  0x16   : > { %590 = vmatpush.bf16.msra.mxu0 %v581_v1  ;;  %1239 = vmatpush.bf16.msra.mxu1 %v581_v1  ;;  %s1480_s13 = scalar_lea.vmem %s1798_s0, %s1134_s10  ;;  %353 = vst.msk [vmem:[#allocation2] sm:$0xff] %vm352_vm2, %v1382_v10  ;;  %s1557_s25 = scalar_lea.vmem %s1802_s4, %s1136_s14  ;;  %v1562_v36 = vld [vmem:[%s1801_s3] ss:$0 sm:$0xff] }
  0x17   : > { %1240 = vmatpush.bf16.msra.mxu2 %v581_v1  ;;  %1241 = vmatpush.bf16.msra.mxu3 %v581_v1  ;;  %v1222_v2 = vld [vmem:[%s1480_s13] sm:$0xff]  ;;  %v1223_v6 = vld [vmem:[%s1480_s13 + $0x8] sm:$0xff]  ;;  %354 = vst.msk [vmem:[#allocation2 + $0x8] sm:$0xff] %vm352_vm2, %v1382_v10  ;;  %v1224_v11 = vld [vmem:[%s1480_s13 + $0x10] sm:$0xff]  ;;  %s1579_s9 = scalar_lea.vmem [#allocation3], %s1132_s8  ;;  %s1238_s10 = sshll.u32 %s1372_s21, 8 }
  0x18   : > { %v1226_v3 = vld [vmem:[%s1480_s13 + $0x20] sm:$0xff]  ;;  %v1227_v7 = vld [vmem:[%s1480_s13 + $0x28] sm:$0xff]  ;;  %355 = vst.msk [vmem:[#allocation2 + $0x10] sm:$0xff] %vm352_vm2, %v1382_v10  ;;  %v1228_v12 = vld [vmem:[%s1480_s13 + $0x30] sm:$0xff]  ;;  %s985_s12 = scalar_lea.hbm %s1803_s5, %s1238_s10 }
  0x19   : > { %v1230_v4 = vld [vmem:[%s1480_s13 + $0x40] sm:$0xff]  ;;  %1201 = vmatmul.msk.bf16.vlgmr.msra.gmra.mxu0 %vm530_vm1, %v1222_v2  ;;  %1205 = vmatmul.msk.bf16.vlgmr.msra.gmra.mxu1 %vm530_vm1, %v1226_v3  ;;  %v1231_v8 = vld [vmem:[%s1480_s13 + $0x48] sm:$0xff]  ;;  %356 = vst.msk [vmem:[#allocation2 + $0x18] sm:$0xff] %vm352_vm2, %v1382_v10  ;;  %v1232_v13 = vld [vmem:[%s1480_s13 + $0x50] sm:$0xff]  ;;  %s988_s14 = sshll.u32 %s985_s12, 4  ;;  %s989_s14 = int_to_ptr.hbm [resolvable:$true] %s988_s14 }
  0x1a   : > { %v1234_v5 = vld [vmem:[%s1480_s13 + $0x60] sm:$0xff]  ;;  %1209 = vmatmul.msk.bf16.vlgmr.msra.gmra.mxu2 %vm530_vm1, %v1230_v4  ;;  %v1235_v9 = vld [vmem:[%s1480_s13 + $0x68] sm:$0xff]  ;;  %357 = vst.msk [vmem:[#allocation2 + $0x20] sm:$0xff] %vm352_vm2, %v1382_v10  ;;  %v1236_v14 = vld [vmem:[%s1480_s13 + $0x70] sm:$0xff]  ;;  %s1316_s16 = sshra.s32 %s989_s14, 4  ;;  %s1317_s16 = int_to_ptr.hbm [resolvable:$true] %s1316_s16 }
  0x1b   : > { %1213 = vmatmul.msk.bf16.vlgmr.msra.gmra.mxu3 %vm530_vm1, %v1234_v5  ;;  %358 = vst.msk [vmem:[#allocation2 + $0x28] sm:$0xff] %vm352_vm2, %v1382_v10  ;;  %v1225_v15 = vld [vmem:[%s1480_s13 + $0x18] sm:$0xff]  ;;  %v844_v42 = vld [vmem:[%s1557_s25] sm:$0xff]  ;;  %s1318_s17 = scalar_lea.hbm %s1317_s16, 256  ;;  %p1323_p1 = scmp.lt.s32.totalorder %s1317_s16, %s1803_s5 }
  0x1c   : > { %359 = vst.msk [vmem:[#allocation2 + $0x30] sm:$0xff] %vm352_vm2, %v1382_v10  ;;  %v1229_v16 = vld [vmem:[%s1480_s13 + $0x38] sm:$0xff]  ;;  %v852_v45 = vld [vmem:[%s1557_s25 + $0x40] sm:$0xff]  ;;  %p1319_p12 = scmp.ne.s32.totalorder %s1317_s16, %s1318_s17  ;;  %p1324_p2 = scmp.lt.s32.totalorder %s1322_s27, %s1318_s17 }
  0x1d   : > { %360 = vst.msk [vmem:[#allocation2 + $0x38] sm:$0xff] %vm352_vm2, %v1382_v10  ;;  %v1233_v17 = vld [vmem:[%s1480_s13 + $0x58] sm:$0xff]  ;;  %v385_v19 = vld [vmem:[#allocation2] sm:$0xff] }
  0x1e   : > { %361 = vst.msk [vmem:[#allocation2 + $0x40] sm:$0xff] %vm352_vm2, %v1382_v10  ;;  %v1237_v18 = vld [vmem:[%s1480_s13 + $0x78] sm:$0xff]  ;;  %v386_v27 = vld [vmem:[#allocation2 + $0x8] sm:$0xff]  ;;  %v860_v1 = vld [vmem:[%s1557_s25 + $0x80] sm:$0xff]  ;;  %s986_s13 = sshll.u32 %s1579_s9, 4  ;;  %p1320_p13 = pnand %p1319_p12, %p1455_p4  ;;  %s987_s13 = int_to_ptr.vmem [resolvable:$true] %s986_s13 }
  0x1f   : > { %362 = vst.msk [vmem:[#allocation2 + $0x48] sm:$0xff] %vm352_vm2, %v1382_v10  ;;  %v387_v52 = vld [vmem:[#allocation2 + $0x10] sm:$0xff]  ;;  %p1325_p3 = por %p1324_p2, %p1323_p1 }
  0x20   : > { %363 = vst.msk [vmem:[#allocation2 + $0x50] sm:$0xff] %vm352_vm2, %v1382_v10  ;;  %p1321_p0 = pneg %p1320_p13 }
  0x21   : > { %364 = vst.msk [vmem:[#allocation2 + $0x58] sm:$0xff] %vm352_vm2, %v1382_v10 }
  0x22   : > { %365 = vst.msk [vmem:[#allocation2 + $0x60] sm:$0xff] %vm352_vm2, %v1382_v10  ;;  %p1326_p5 = pnand %p1325_p3, %p1321_p0 }
  0x23   : > { %366 = vst.msk [vmem:[#allocation2 + $0x68] sm:$0xff] %vm352_vm2, %v1382_v10 }
  0x24   : > { %367 = vst.msk [vmem:[#allocation2 + $0x70] sm:$0xff] %vm352_vm2, %v1382_v10 }
  0x25   : > { %368 = vst.msk [vmem:[#allocation2 + $0x78] sm:$0xff] %vm352_vm2, %v1382_v10  ;;  %v393_v20 = vld [vmem:[#allocation2 + $0x40] sm:$0xff] }
  0x26   : > { %369 = vst.msk [vmem:[#allocation2 + $0x80] sm:$0xff] %vm352_vm2, %v1382_v10  ;;  %v394_v28 = vld [vmem:[#allocation2 + $0x48] sm:$0xff] }
  0x27   : > { %370 = vst.msk [vmem:[#allocation2 + $0x88] sm:$0xff] %vm352_vm2, %v1382_v10  ;;  %v395_v56 = vld [vmem:[#allocation2 + $0x50] sm:$0xff] }
  0x28   : > { %371 = vst.msk [vmem:[#allocation2 + $0x90] sm:$0xff] %vm352_vm2, %v1382_v10 }
  0x29   : > { %1202 = vmatmul.msk.bf16.gmra.mxu0 %vm530_vm1, %v1223_v6  ;;  %1206 = vmatmul.msk.bf16.gmra.mxu1 %vm530_vm1, %v1227_v7  ;;  %372 = vst.msk [vmem:[#allocation2 + $0x98] sm:$0xff] %vm352_vm2, %v1382_v10  ;;  %v868_v6 = vld [vmem:[%s1557_s25 + $0xc0] sm:$0xff] }
  0x2a   : > { %1210 = vmatmul.msk.bf16.gmra.mxu2 %vm530_vm1, %v1231_v8  ;;  %373 = vst.msk [vmem:[#allocation2 + $0xa0] sm:$0xff] %vm352_vm2, %v1382_v10 }
  0x2b   : > { %1214 = vmatmul.msk.bf16.gmra.mxu3 %vm530_vm1, %v1235_v9  ;;  %374 = vst.msk [vmem:[#allocation2 + $0xa8] sm:$0xff] %vm352_vm2, %v1382_v10 }
  0x2c   : > { %375 = vst.msk [vmem:[#allocation2 + $0xb0] sm:$0xff] %vm352_vm2, %v1382_v10 }
  0x2d   : > { %376 = vst.msk [vmem:[#allocation2 + $0xb8] sm:$0xff] %vm352_vm2, %v1382_v10  ;;  %v401_v25 = vld [vmem:[#allocation2 + $0x80] sm:$0xff] }
  0x2e   : > { %377 = vst.msk [vmem:[#allocation2 + $0xc0] sm:$0xff] %vm352_vm2, %v1382_v10  ;;  %v402_v46 = vld [vmem:[#allocation2 + $0x88] sm:$0xff] }
  0x2f   : > { %378 = vst.msk [vmem:[#allocation2 + $0xc8] sm:$0xff] %vm352_vm2, %v1382_v10 }
  0x30   : > { %379 = vst.msk [vmem:[#allocation2 + $0xd0] sm:$0xff] %vm352_vm2, %v1382_v10 }
  0x31   : > { %380 = vst.msk [vmem:[#allocation2 + $0xd8] sm:$0xff] %vm352_vm2, %v1382_v10 }
  0x32   : > { %381 = vst.msk [vmem:[#allocation2 + $0xe0] sm:$0xff] %vm352_vm2, %v1382_v10 }
  0x33   : > { %382 = vst.msk [vmem:[#allocation2 + $0xe8] sm:$0xff] %vm352_vm2, %v1382_v10 }
  0x34   : > { %383 = vst.msk [vmem:[#allocation2 + $0xf0] sm:$0xff] %vm352_vm2, %v1382_v10 }
  0x35   : > { %384 = vst.msk [vmem:[#allocation2 + $0xf8] sm:$0xff] %vm352_vm2, %v1382_v10  ;;  %v409_v26 = vld [vmem:[#allocation2 + $0xc0] sm:$0xff]  ;;  %v845_v10 = vld [vmem:[%s1557_s25 + $0x8] sm:$0xff] }
  0x36   : > { %v410_v48 = vld [vmem:[#allocation2 + $0xc8] sm:$0xff] }
  0x39   : > { %1203 = vmatmul.msk.bf16.gmra.mxu0 %vm530_vm1, %v1224_v11  ;;  %1207 = vmatmul.msk.bf16.gmra.mxu1 %vm530_vm1, %v1228_v12 }
  0x3a   : > { %1211 = vmatmul.msk.bf16.gmra.mxu2 %vm530_vm1, %v1232_v13 }
  0x3b   : > { %1215 = vmatmul.msk.bf16.gmra.mxu3 %vm530_vm1, %v1236_v14  ;;  %v853_v14 = vld [vmem:[%s1557_s25 + $0x48] sm:$0xff] }
  0x49   : > { %1204 = vmatmul.msk.bf16.gmra.mxu0 %vm530_vm1, %v1225_v15  ;;  %1208 = vmatmul.msk.bf16.gmra.mxu1 %vm530_vm1, %v1229_v16 }
  0x4a   : > { %1212 = vmatmul.msk.bf16.gmra.mxu2 %vm530_vm1, %v1233_v17  ;;  %v403_v17 = vld [vmem:[#allocation2 + $0x90] sm:$0xff] }
  0x4b   : > { %1216 = vmatmul.msk.bf16.gmra.mxu3 %vm530_vm1, %v1237_v18 }
  0x96   : > { %v592_v21 = vpop.f32.mrf.mxu0  ;;  %v612_v22 = vpop.f32.mrf.mxu1 }
  0x97   : > { %v672_v23 = vadd.f32 %v592_v21, %v385_v19  ;;  %v680_v24 = vadd.f32 %v612_v22, %v393_v20  ;;  %v411_v22 = vld [vmem:[#allocation2 + $0xd0] sm:$0xff] }
  0x99   : > { %705 = vst.msk [vmem:[#allocation2] sm:$0xff] %vm352_vm2, %v672_v23 }
  0x9a   : > { %713 = vst.msk [vmem:[#allocation2 + $0x40] sm:$0xff] %vm352_vm2, %v680_v24 }
  0x9d   : > { %v632_v30 = vpop.f32.mrf.mxu2 }
  0x9e   : > { %v652_v31 = vpop.f32.mrf.mxu3  ;;  %v688_v32 = vadd.f32 %v632_v30, %v401_v25  ;;  %v594_v34 = vpop.f32.mrf.mxu0 }
  0x9f   : > { %v696_v33 = vadd.f32 %v652_v31, %v409_v26  ;;  %v614_v35 = vpop.f32.mrf.mxu1  ;;  %v673_v37 = vadd.f32 %v594_v34, %v386_v27 }
  0xa0   : > { %v681_v38 = vadd.f32 %v614_v35, %v394_v28  ;;  %v740_v39 = vld [vmem:[#allocation2] sm:$0xff]  ;;  %721 = vst.msk [vmem:[#allocation2 + $0x80] sm:$0xff] %vm352_vm2, %v688_v32  ;;  %v388_v28 = vld [vmem:[#allocation2 + $0x18] sm:$0xff]  ;;  %v861_v35 = vld [vmem:[%s1557_s25 + $0x88] sm:$0xff] }
  0xa1   : > { %v776_v40 = vmul.f32 %v1552_v29, %v740_v39  ;;  %v748_v41 = vld [vmem:[#allocation2 + $0x40] sm:$0xff]  ;;  %729 = vst.msk [vmem:[#allocation2 + $0xc0] sm:$0xff] %vm352_vm2, %v696_v33  ;;  %v396_v33 = vld [vmem:[#allocation2 + $0x58] sm:$0xff] }
  0xa2   : > { %v784_v43 = vmul.f32 %v1552_v29, %v748_v41  ;;  %706 = vst.msk [vmem:[#allocation2 + $0x8] sm:$0xff] %vm352_vm2, %v673_v37 }
  0xa3   : > { %v812_v44 = vadd.f32 %v1562_v36, %v776_v40  ;;  %714 = vst.msk [vmem:[#allocation2 + $0x48] sm:$0xff] %vm352_vm2, %v681_v38 }
  0xa4   : > { %v820_v47 = vadd.f32 %v1562_v36, %v784_v43 }
  0xa5   : > { %v876_v49 = vadd.f32 %v844_v42, %v812_v44  ;;  %v634_v50 = vpop.f32.mrf.mxu2  ;;  %v404_v44 = vld [vmem:[#allocation2 + $0x98] sm:$0xff] }
  0xa6   : > { %v654_v51 = vpop.f32.mrf.mxu3  ;;  %v884_v53 = vadd.f32 %v852_v45, %v820_v47  ;;  %v689_v54 = vadd.f32 %v634_v50, %v402_v46  ;;  %v597_v55 = vpop.f32.mrf.mxu0  ;;  %v412_v45 = vld [vmem:[#allocation2 + $0xd8] sm:$0xff]  ;;  %v869_v47 = vld [vmem:[%s1557_s25 + $0xc8] sm:$0xff] }
  0xa7   : > { %v617_v57 = vpop.f32.mrf.mxu1  ;;  %v908_v58 = vmax.f32 %v876_v49, 0.0  ;;  %v756_v59 = vld [vmem:[#allocation2 + $0x80] sm:$0xff]  ;;  %v697_v60 = vadd.f32 %v654_v51, %v410_v48  ;;  %v674_v0 = vadd.f32 %v597_v55, %v387_v52  ;;  %v846_v51 = vld [vmem:[%s1557_s25 + $0x10] sm:$0xff] }
  0xa8   : > { %v916_v61 = vmax.f32 %v884_v53, 0.0  ;;  %v792_v62 = vmul.f32 %v1552_v29, %v756_v59  ;;  %v764_v63 = vld [vmem:[#allocation2 + $0xc0] sm:$0xff]  ;;  %722 = vst.msk [vmem:[#allocation2 + $0x88] sm:$0xff] %vm352_vm2, %v689_v54  ;;  %v682_v4 = vadd.f32 %v617_v57, %v395_v56  ;;  %v854_v57 = vld [vmem:[%s1557_s25 + $0x50] sm:$0xff] }
  0xa9   : > { %940 = vst.msk [vmem:[%s1579_s9] sm:$0xff] %vm352_vm2, %v908_v58  ;;  %v800_v2 = vmul.f32 %v1552_v29, %v764_v63  ;;  %v741_v3 = vld [vmem:[#allocation2 + $0x8] sm:$0xff] }
  0xaa   : > { %948 = vst.msk [vmem:[%s1579_s9 + $0x40] sm:$0xff] %vm352_vm2, %v916_v61  ;;  %v828_v5 = vadd.f32 %v1562_v36, %v792_v62  ;;  %v777_v7 = vmul.f32 %v1552_v29, %v741_v3  ;;  %v749_v8 = vld [vmem:[#allocation2 + $0x48] sm:$0xff] }
  0xab   : > { %v836_v9 = vadd.f32 %v1562_v36, %v800_v2  ;;  %v785_v11 = vmul.f32 %v1552_v29, %v749_v8  ;;  %730 = vst.msk [vmem:[#allocation2 + $0xc8] sm:$0xff] %vm352_vm2, %v697_v60  ;;  %v397_v2 = vld [vmem:[#allocation2 + $0x60] sm:$0xff] }
  0xac   : > { %v892_v12 = vadd.f32 %v860_v1, %v828_v5  ;;  %v813_v13 = vadd.f32 %v1562_v36, %v777_v7  ;;  %707 = vst.msk [vmem:[#allocation2 + $0x10] sm:$0xff] %vm352_vm2, %v674_v0  ;;  %v389_v0 = vld [vmem:[#allocation2 + $0x20] sm:$0xff] }
  0xad   : > { %v900_v15 = vadd.f32 %v868_v6, %v836_v9  ;;  %v821_v16 = vadd.f32 %v1562_v36, %v785_v11  ;;  %715 = vst.msk [vmem:[#allocation2 + $0x50] sm:$0xff] %vm352_vm2, %v682_v4  ;;  %v637_v18 = vpop.f32.mrf.mxu2  ;;  %v413_v11 = vld [vmem:[#allocation2 + $0xe0] sm:$0xff] }
  0xae   : > { %v657_v19 = vpop.f32.mrf.mxu3  ;;  %v924_v20 = vmax.f32 %v892_v12, 0.0  ;;  %v877_v21 = vadd.f32 %v845_v10, %v813_v13  ;;  %v599_v23 = vpop.f32.mrf.mxu0  ;;  %v690_v32 = vadd.f32 %v637_v18, %v403_v17  ;;  %v405_v10 = vld [vmem:[#allocation2 + $0xa0] sm:$0xff] }
  0xaf   : > { %v619_v24 = vpop.f32.mrf.mxu1  ;;  %v932_v25 = vmax.f32 %v900_v15, 0.0  ;;  %v885_v26 = vadd.f32 %v853_v14, %v821_v16  ;;  %v757_v27 = vld [vmem:[#allocation2 + $0x88] sm:$0xff]  ;;  %v698_v37 = vadd.f32 %v657_v19, %v411_v22  ;;  %v675_v40 = vadd.f32 %v599_v23, %v388_v28  ;;  %v862_v16 = vld [vmem:[%s1557_s25 + $0x90] sm:$0xff] }
  0xb0   : > { %956 = vst.msk [vmem:[%s1579_s9 + $0x80] sm:$0xff] %vm352_vm2, %v924_v20  ;;  %v909_v30 = vmax.f32 %v877_v21, 0.0  ;;  %v793_v31 = vmul.f32 %v1552_v29, %v757_v27  ;;  %v683_v43 = vadd.f32 %v619_v24, %v396_v33  ;;  %v390_v14 = vld [vmem:[#allocation2 + $0x28] sm:$0xff]  ;;  %v870_v22 = vld [vmem:[%s1557_s25 + $0xd0] sm:$0xff] }
  0xb1   : > { %964 = vst.msk [vmem:[%s1579_s9 + $0xc0] sm:$0xff] %vm352_vm2, %v932_v25  ;;  %v917_v34 = vmax.f32 %v885_v26, 0.0  ;;  %v398_v15 = vld [vmem:[#allocation2 + $0x68] sm:$0xff] }
  0xb2   : > { %941 = vst.msk [vmem:[%s1579_s9 + $0x8] sm:$0xff] %vm352_vm2, %v909_v30  ;;  %v829_v38 = vadd.f32 %v1562_v36, %v793_v31  ;;  %v765_v39 = vld [vmem:[#allocation2 + $0xc8] sm:$0xff]  ;;  %v847_v31 = vld [vmem:[%s1557_s25 + $0x18] sm:$0xff] }
  0xb3   : > { %949 = vst.msk [vmem:[%s1579_s9 + $0x48] sm:$0xff] %vm352_vm2, %v917_v34  ;;  %v801_v41 = vmul.f32 %v1552_v29, %v765_v39  ;;  %v742_v42 = vld [vmem:[#allocation2 + $0x10] sm:$0xff] }
  0xb4   : > { %v893_v46 = vadd.f32 %v861_v35, %v829_v38  ;;  %v778_v48 = vmul.f32 %v1552_v29, %v742_v42  ;;  %v750_v49 = vld [vmem:[#allocation2 + $0x50] sm:$0xff]  ;;  %723 = vst.msk [vmem:[#allocation2 + $0x90] sm:$0xff] %vm352_vm2, %v690_v32  ;;  %v855_v38 = vld [vmem:[%s1557_s25 + $0x58] sm:$0xff] }
  0xb5   : > { %v837_v50 = vadd.f32 %v1562_v36, %v801_v41  ;;  %v786_v52 = vmul.f32 %v1552_v29, %v750_v49  ;;  %731 = vst.msk [vmem:[#allocation2 + $0xd0] sm:$0xff] %vm352_vm2, %v698_v37  ;;  %v639_v53 = vpop.f32.mrf.mxu2 }
  0xb6   : > { %v659_v54 = vpop.f32.mrf.mxu3  ;;  %v925_v55 = vmax.f32 %v893_v46, 0.0  ;;  %v814_v56 = vadd.f32 %v1562_v36, %v778_v48  ;;  %708 = vst.msk [vmem:[#allocation2 + $0x18] sm:$0xff] %vm352_vm2, %v675_v40  ;;  %v691_v58 = vadd.f32 %v639_v53, %v404_v44  ;;  %v602_v60 = vpop.f32.mrf.mxu0  ;;  %v863_v46 = vld [vmem:[%s1557_s25 + $0x98] sm:$0xff] }
  0xb7   : > { %v699_v59 = vadd.f32 %v659_v54, %v412_v45  ;;  %v622_v61 = vpop.f32.mrf.mxu1  ;;  %v901_v62 = vadd.f32 %v869_v47, %v837_v50  ;;  %v822_v63 = vadd.f32 %v1562_v36, %v786_v52  ;;  %716 = vst.msk [vmem:[#allocation2 + $0x58] sm:$0xff] %vm352_vm2, %v683_v43  ;;  %v676_v6 = vadd.f32 %v602_v60, %v389_v0  ;;  %v406_v52 = vld [vmem:[#allocation2 + $0xa8] sm:$0xff] }
  0xb8   : > { %957 = vst.msk [vmem:[%s1579_s9 + $0x88] sm:$0xff] %vm352_vm2, %v925_v55  ;;  %v878_v1 = vadd.f32 %v846_v51, %v814_v56  ;;  %v684_v9 = vadd.f32 %v622_v61, %v397_v2  ;;  %v871_v51 = vld [vmem:[%s1557_s25 + $0xd8] sm:$0xff]  ;;  %v414_v55 = vld [vmem:[#allocation2 + $0xe8] sm:$0xff]  ;;  %v391_v61 = vld [vmem:[#allocation2 + $0x30] sm:$0xff] }
  0xb9   : > { %v933_v3 = vmax.f32 %v901_v62, 0.0  ;;  %v886_v4 = vadd.f32 %v854_v57, %v822_v63  ;;  %724 = vst.msk [vmem:[#allocation2 + $0x98] sm:$0xff] %vm352_vm2, %v691_v58 }
  0xba   : > { %v910_v5 = vmax.f32 %v878_v1, 0.0  ;;  %732 = vst.msk [vmem:[#allocation2 + $0xd8] sm:$0xff] %vm352_vm2, %v699_v59 }
  0xbb   : > { %965 = vst.msk [vmem:[%s1579_s9 + $0xc8] sm:$0xff] %vm352_vm2, %v933_v3  ;;  %v918_v7 = vmax.f32 %v886_v4, 0.0  ;;  %v758_v8 = vld [vmem:[#allocation2 + $0x90] sm:$0xff] }
  0xbc   : > { %942 = vst.msk [vmem:[%s1579_s9 + $0x10] sm:$0xff] %vm352_vm2, %v910_v5  ;;  %v794_v12 = vmul.f32 %v1552_v29, %v758_v8  ;;  %v766_v13 = vld [vmem:[#allocation2 + $0xd0] sm:$0xff] }
  0xbd   : > { %950 = vst.msk [vmem:[%s1579_s9 + $0x50] sm:$0xff] %vm352_vm2, %v918_v7  ;;  %v802_v17 = vmul.f32 %v1552_v29, %v766_v13  ;;  %v743_v18 = vld [vmem:[#allocation2 + $0x18] sm:$0xff]  ;;  %v642_v19 = vpop.f32.mrf.mxu2  ;;  %v399_v3 = vld [vmem:[#allocation2 + $0x70] sm:$0xff] }
  0xbe   : > { %v662_v20 = vpop.f32.mrf.mxu3  ;;  %v830_v21 = vadd.f32 %v1562_v36, %v794_v12  ;;  %v779_v23 = vmul.f32 %v1552_v29, %v743_v18  ;;  %v751_v24 = vld [vmem:[#allocation2 + $0x58] sm:$0xff]  ;;  %709 = vst.msk [vmem:[#allocation2 + $0x20] sm:$0xff] %vm352_vm2, %v676_v6  ;;  %v692_v25 = vadd.f32 %v642_v19, %v405_v10  ;;  %v604_v27 = vpop.f32.mrf.mxu0  ;;  %v848_v6 = vld [vmem:[%s1557_s25 + $0x20] sm:$0xff] }
  0xbf   : > { %v700_v26 = vadd.f32 %v662_v20, %v413_v11  ;;  %v624_v28 = vpop.f32.mrf.mxu1  ;;  %v838_v30 = vadd.f32 %v1562_v36, %v802_v17  ;;  %v787_v32 = vmul.f32 %v1552_v29, %v751_v24  ;;  %717 = vst.msk [vmem:[#allocation2 + $0x60] sm:$0xff] %vm352_vm2, %v684_v9  ;;  %v677_v33 = vadd.f32 %v604_v27, %v390_v14  ;;  %v856_v12 = vld [vmem:[%s1557_s25 + $0x60] sm:$0xff] }
  0xc0   : > { %v685_v34 = vadd.f32 %v624_v28, %v398_v15  ;;  %v894_v35 = vadd.f32 %v862_v16, %v830_v21  ;;  %v815_v37 = vadd.f32 %v1562_v36, %v779_v23  ;;  %v759_v39 = vld [vmem:[#allocation2 + $0x98] sm:$0xff]  ;;  %725 = vst.msk [vmem:[#allocation2 + $0xa0] sm:$0xff] %vm352_vm2, %v692_v25  ;;  %v864_v17 = vld [vmem:[%s1557_s25 + $0xa0] sm:$0xff]  ;;  %v849_v28 = vld [vmem:[%s1557_s25 + $0x28] sm:$0xff] }
  0xc1   : > { %v902_v40 = vadd.f32 %v870_v22, %v838_v30  ;;  %v823_v41 = vadd.f32 %v1562_v36, %v787_v32  ;;  %v795_v42 = vmul.f32 %v1552_v29, %v759_v39  ;;  %v767_v43 = vld [vmem:[#allocation2 + $0xd8] sm:$0xff]  ;;  %733 = vst.msk [vmem:[#allocation2 + $0xe0] sm:$0xff] %vm352_vm2, %v700_v26  ;;  %v872_v23 = vld [vmem:[%s1557_s25 + $0xe0] sm:$0xff]  ;;  %v407_v39 = vld [vmem:[#allocation2 + $0xb0] sm:$0xff] }
  0xc2   : > { %v926_v44 = vmax.f32 %v894_v35, 0.0  ;;  %v879_v45 = vadd.f32 %v847_v31, %v815_v37  ;;  %v803_v47 = vmul.f32 %v1552_v29, %v767_v43  ;;  %710 = vst.msk [vmem:[#allocation2 + $0x28] sm:$0xff] %vm352_vm2, %v677_v33 }
  0xc3   : > { %v934_v48 = vmax.f32 %v902_v40, 0.0  ;;  %v887_v49 = vadd.f32 %v855_v38, %v823_v41  ;;  %v831_v50 = vadd.f32 %v1562_v36, %v795_v42  ;;  %718 = vst.msk [vmem:[#allocation2 + $0x68] sm:$0xff] %vm352_vm2, %v685_v34  ;;  %v857_v34 = vld [vmem:[%s1557_s25 + $0x68] sm:$0xff] }
  0xc4   : > { %958 = vst.msk [vmem:[%s1579_s9 + $0x90] sm:$0xff] %vm352_vm2, %v926_v44  ;;  %v911_v53 = vmax.f32 %v879_v45, 0.0  ;;  %v839_v54 = vadd.f32 %v1562_v36, %v803_v47  ;;  %v415_v44 = vld [vmem:[#allocation2 + $0xf0] sm:$0xff] }
  0xc5   : > { %966 = vst.msk [vmem:[%s1579_s9 + $0xd0] sm:$0xff] %vm352_vm2, %v934_v48  ;;  %v919_v56 = vmax.f32 %v887_v49, 0.0  ;;  %v895_v57 = vadd.f32 %v863_v46, %v831_v50  ;;  %v744_v58 = vld [vmem:[#allocation2 + $0x20] sm:$0xff]  ;;  %v644_v59 = vpop.f32.mrf.mxu2  ;;  %v392_v48 = vld [vmem:[#allocation2 + $0x38] sm:$0xff] }
  0xc6   : > { %v664_v60 = vpop.f32.mrf.mxu3  ;;  %943 = vst.msk [vmem:[%s1579_s9 + $0x18] sm:$0xff] %vm352_vm2, %v911_v53  ;;  %v903_v62 = vadd.f32 %v871_v51, %v839_v54  ;;  %v780_v63 = vmul.f32 %v1552_v29, %v744_v58  ;;  %v752_v0 = vld [vmem:[#allocation2 + $0x60] sm:$0xff]  ;;  %v693_v1 = vadd.f32 %v644_v59, %v406_v52  ;;  %v607_v2 = vpop.f32.mrf.mxu0  ;;  %v400_v53 = vld [vmem:[#allocation2 + $0x78] sm:$0xff] }
  0xc7   : > { %v627_v4 = vpop.f32.mrf.mxu1  ;;  %951 = vst.msk [vmem:[%s1579_s9 + $0x58] sm:$0xff] %vm352_vm2, %v919_v56  ;;  %v927_v5 = vmax.f32 %v895_v57, 0.0  ;;  %v788_v7 = vmul.f32 %v1552_v29, %v752_v0  ;;  %v760_v8 = vld [vmem:[#allocation2 + $0xa0] sm:$0xff]  ;;  %v701_v9 = vadd.f32 %v664_v60, %v414_v55  ;;  %v678_v15 = vadd.f32 %v607_v2, %v391_v61  ;;  %v865_v56 = vld [vmem:[%s1557_s25 + $0xa8] sm:$0xff]  ;;  %v408_v0 = vld [vmem:[#allocation2 + $0xb8] sm:$0xff] }
  0xc8   : > { %v935_v10 = vmax.f32 %v903_v62, 0.0  ;;  %v816_v11 = vadd.f32 %v1562_v36, %v780_v63  ;;  %v796_v13 = vmul.f32 %v1552_v29, %v760_v8  ;;  %v768_v14 = vld [vmem:[#allocation2 + $0xe0] sm:$0xff]  ;;  %726 = vst.msk [vmem:[#allocation2 + $0xa8] sm:$0xff] %vm352_vm2, %v693_v1  ;;  %v686_v20 = vadd.f32 %v627_v4, %v399_v3  ;;  %v416_v1 = vld [vmem:[#allocation2 + $0xf8] sm:$0xff]  ;;  %v873_v3 = vld [vmem:[%s1557_s25 + $0xe8] sm:$0xff] }
  0xc9   : > { %959 = vst.msk [vmem:[%s1579_s9 + $0x98] sm:$0xff] %vm352_vm2, %v927_v5  ;;  %v824_v16 = vadd.f32 %v1562_v36, %v788_v7  ;;  %v804_v18 = vmul.f32 %v1552_v29, %v768_v14  ;;  %v745_v19 = vld [vmem:[#allocation2 + $0x28] sm:$0xff]  ;;  %v850_v7 = vld [vmem:[%s1557_s25 + $0x30] sm:$0xff] }
  0xca   : > { %967 = vst.msk [vmem:[%s1579_s9 + $0xd8] sm:$0xff] %vm352_vm2, %v935_v10  ;;  %v880_v21 = vadd.f32 %v848_v6, %v816_v11  ;;  %v832_v22 = vadd.f32 %v1562_v36, %v796_v13  ;;  %v781_v24 = vmul.f32 %v1552_v29, %v745_v19  ;;  %v753_v25 = vld [vmem:[#allocation2 + $0x68] sm:$0xff]  ;;  %v858_v13 = vld [vmem:[%s1557_s25 + $0x70] sm:$0xff] }
  0xcb   : > { %v888_v26 = vadd.f32 %v856_v12, %v824_v16  ;;  %v840_v27 = vadd.f32 %v1562_v36, %v804_v18  ;;  %v789_v30 = vmul.f32 %v1552_v29, %v753_v25  ;;  %734 = vst.msk [vmem:[#allocation2 + $0xe8] sm:$0xff] %vm352_vm2, %v701_v9 }
  0xcc   : > { %v912_v31 = vmax.f32 %v880_v21, 0.0  ;;  %v896_v32 = vadd.f32 %v864_v17, %v832_v22  ;;  %v817_v33 = vadd.f32 %v1562_v36, %v781_v24  ;;  %711 = vst.msk [vmem:[#allocation2 + $0x30] sm:$0xff] %vm352_vm2, %v678_v15 }
  0xcd   : > { %v920_v35 = vmax.f32 %v888_v26, 0.0  ;;  %v904_v37 = vadd.f32 %v872_v23, %v840_v27  ;;  %v825_v38 = vadd.f32 %v1562_v36, %v789_v30  ;;  %719 = vst.msk [vmem:[#allocation2 + $0x70] sm:$0xff] %vm352_vm2, %v686_v20  ;;  %v647_v40 = vpop.f32.mrf.mxu2  ;;  %v866_v26 = vld [vmem:[%s1557_s25 + $0xb0] sm:$0xff] }
  0xce   : > { %v667_v41 = vpop.f32.mrf.mxu3  ;;  %944 = vst.msk [vmem:[%s1579_s9 + $0x20] sm:$0xff] %vm352_vm2, %v912_v31  ;;  %v928_v42 = vmax.f32 %v896_v32, 0.0  ;;  %v881_v43 = vadd.f32 %v849_v28, %v817_v33  ;;  %v609_v49 = vpop.f32.mrf.mxu0  ;;  %v694_v52 = vadd.f32 %v647_v40, %v407_v39  ;;  %v874_v31 = vld [vmem:[%s1557_s25 + $0xf0] sm:$0xff]  ;;  %v859_v40 = vld [vmem:[%s1557_s25 + $0x78] sm:$0xff] }
  0xcf   : > { %952 = vst.msk [vmem:[%s1579_s9 + $0x60] sm:$0xff] %vm352_vm2, %v920_v35  ;;  %v936_v45 = vmax.f32 %v904_v37, 0.0  ;;  %v889_v46 = vadd.f32 %v857_v34, %v825_v38  ;;  %v761_v47 = vld [vmem:[#allocation2 + $0xa8] sm:$0xff]  ;;  %v629_v54 = vpop.f32.mrf.mxu1  ;;  %v702_v57 = vadd.f32 %v667_v41, %v415_v44  ;;  %v679_v60 = vadd.f32 %v609_v49, %v392_v48  ;;  %v851_v35 = vld [vmem:[%s1557_s25 + $0x38] sm:$0xff] }
  0xd0   : > { %960 = vst.msk [vmem:[%s1579_s9 + $0xa0] sm:$0xff] %vm352_vm2, %v928_v42  ;;  %v913_v50 = vmax.f32 %v881_v43, 0.0  ;;  %v797_v51 = vmul.f32 %v1552_v29, %v761_v47  ;;  %v687_v63 = vadd.f32 %v629_v54, %v400_v53  ;;  %v867_v48 = vld [vmem:[%s1557_s25 + $0xb8] sm:$0xff] }
  0xd1   : > { %968 = vst.msk [vmem:[%s1579_s9 + $0xe0] sm:$0xff] %vm352_vm2, %v936_v45  ;;  %v921_v55 = vmax.f32 %v889_v46, 0.0  ;;  %v875_v53 = vld [vmem:[%s1557_s25 + $0xf8] sm:$0xff] }
  0xd2   : > { %945 = vst.msk [vmem:[%s1579_s9 + $0x28] sm:$0xff] %vm352_vm2, %v913_v50  ;;  %v833_v58 = vadd.f32 %v1562_v36, %v797_v51  ;;  %v769_v59 = vld [vmem:[#allocation2 + $0xe8] sm:$0xff] }
  0xd3   : > { %953 = vst.msk [vmem:[%s1579_s9 + $0x68] sm:$0xff] %vm352_vm2, %v921_v55  ;;  %v805_v61 = vmul.f32 %v1552_v29, %v769_v59  ;;  %v746_v62 = vld [vmem:[#allocation2 + $0x30] sm:$0xff] }
  0xd4   : > { %v897_v2 = vadd.f32 %v865_v56, %v833_v58  ;;  %v782_v4 = vmul.f32 %v1552_v29, %v746_v62  ;;  %v754_v5 = vld [vmem:[#allocation2 + $0x70] sm:$0xff]  ;;  %727 = vst.msk [vmem:[#allocation2 + $0xb0] sm:$0xff] %vm352_vm2, %v694_v52 }
  0xd5   : > { %v841_v6 = vadd.f32 %v1562_v36, %v805_v61  ;;  %v790_v8 = vmul.f32 %v1552_v29, %v754_v5  ;;  %735 = vst.msk [vmem:[#allocation2 + $0xf0] sm:$0xff] %vm352_vm2, %v702_v57  ;;  %v649_v9 = vpop.f32.mrf.mxu2 }
  0xd6   : > { %v669_v10 = vpop.f32.mrf.mxu3  ;;  %v929_v11 = vmax.f32 %v897_v2, 0.0  ;;  %v818_v12 = vadd.f32 %v1562_v36, %v782_v4  ;;  %712 = vst.msk [vmem:[#allocation2 + $0x38] sm:$0xff] %vm352_vm2, %v679_v60  ;;  %v695_v14 = vadd.f32 %v649_v9, %v408_v0 }
  0xd7   : > { %v703_v15 = vadd.f32 %v669_v10, %v416_v1  ;;  %v905_v16 = vadd.f32 %v873_v3, %v841_v6  ;;  %v826_v17 = vadd.f32 %v1562_v36, %v790_v8  ;;  %720 = vst.msk [vmem:[#allocation2 + $0x78] sm:$0xff] %vm352_vm2, %v687_v63 }
  0xd8   : > { %961 = vst.msk [vmem:[%s1579_s9 + $0xa8] sm:$0xff] %vm352_vm2, %v929_v11  ;;  %v882_v18 = vadd.f32 %v850_v7, %v818_v12 }
  0xd9   : > { %v937_v19 = vmax.f32 %v905_v16, 0.0  ;;  %v890_v20 = vadd.f32 %v858_v13, %v826_v17  ;;  %728 = vst.msk [vmem:[#allocation2 + $0xb8] sm:$0xff] %vm352_vm2, %v695_v14 }
  0xda   : > { %v914_v21 = vmax.f32 %v882_v18, 0.0  ;;  %736 = vst.msk [vmem:[#allocation2 + $0xf8] sm:$0xff] %vm352_vm2, %v703_v15 }
  0xdb   : > { %969 = vst.msk [vmem:[%s1579_s9 + $0xe8] sm:$0xff] %vm352_vm2, %v937_v19  ;;  %v922_v22 = vmax.f32 %v890_v20, 0.0  ;;  %v762_v23 = vld [vmem:[#allocation2 + $0xb0] sm:$0xff] }
  0xdc   : > { %946 = vst.msk [vmem:[%s1579_s9 + $0x30] sm:$0xff] %vm352_vm2, %v914_v21  ;;  %v798_v24 = vmul.f32 %v1552_v29, %v762_v23  ;;  %v770_v25 = vld [vmem:[#allocation2 + $0xf0] sm:$0xff] }
  0xdd   : > { %954 = vst.msk [vmem:[%s1579_s9 + $0x70] sm:$0xff] %vm352_vm2, %v922_v22  ;;  %v806_v27 = vmul.f32 %v1552_v29, %v770_v25  ;;  %v747_v28 = vld [vmem:[#allocation2 + $0x38] sm:$0xff] }
  0xde   : > { %v834_v30 = vadd.f32 %v1562_v36, %v798_v24  ;;  %v783_v32 = vmul.f32 %v1552_v29, %v747_v28  ;;  %v755_v33 = vld [vmem:[#allocation2 + $0x78] sm:$0xff] }
  0xdf   : > { %v842_v34 = vadd.f32 %v1562_v36, %v806_v27  ;;  %v791_v37 = vmul.f32 %v1552_v29, %v755_v33 }
  0xe0   : > { %v898_v38 = vadd.f32 %v866_v26, %v834_v30  ;;  %v819_v39 = vadd.f32 %v1562_v36, %v783_v32  ;;  %v763_v41 = vld [vmem:[#allocation2 + $0xb8] sm:$0xff] }
  0xe1   : > { %v906_v42 = vadd.f32 %v874_v31, %v842_v34  ;;  %v827_v43 = vadd.f32 %v1562_v36, %v791_v37  ;;  %v799_v44 = vmul.f32 %v1552_v29, %v763_v41  ;;  %v771_v45 = vld [vmem:[#allocation2 + $0xf8] sm:$0xff] }
  0xe2   : > { %v930_v46 = vmax.f32 %v898_v38, 0.0  ;;  %v883_v47 = vadd.f32 %v851_v35, %v819_v39  ;;  %v807_v49 = vmul.f32 %v1552_v29, %v771_v45 }
  0xe3   : > { %v938_v50 = vmax.f32 %v906_v42, 0.0  ;;  %v891_v51 = vadd.f32 %v859_v40, %v827_v43  ;;  %v835_v52 = vadd.f32 %v1562_v36, %v799_v44 }
  0xe4   : > { %962 = vst.msk [vmem:[%s1579_s9 + $0xb0] sm:$0xff] %vm352_vm2, %v930_v46  ;;  %v915_v54 = vmax.f32 %v883_v47, 0.0  ;;  %v843_v55 = vadd.f32 %v1562_v36, %v807_v49 }
  0xe5   : > { %970 = vst.msk [vmem:[%s1579_s9 + $0xf0] sm:$0xff] %vm352_vm2, %v938_v50  ;;  %v923_v56 = vmax.f32 %v891_v51, 0.0  ;;  %v899_v29 = vadd.f32 %v867_v48, %v835_v52 }
  0xe6   : > { %947 = vst.msk [vmem:[%s1579_s9 + $0x38] sm:$0xff] %vm352_vm2, %v915_v54  ;;  %v907_v57 = vadd.f32 %v875_v53, %v843_v55 }
  0xe7   : > { %955 = vst.msk [vmem:[%s1579_s9 + $0x78] sm:$0xff] %vm352_vm2, %v923_v56  ;;  %v931_v58 = vmax.f32 %v899_v29, 0.0 }
  0xe8   : > { %v939_v59 = vmax.f32 %v907_v57, 0.0 }
  0xe9   : > { %963 = vst.msk [vmem:[%s1579_s9 + $0xb8] sm:$0xff] %vm352_vm2, %v931_v58 }
  0xea   : > { %971 = vst.msk [vmem:[%s1579_s9 + $0xf8] sm:$0xff] %vm352_vm2, %v939_v59 }
  0xeb   : > { %1329 = shalt.err (!%p1326_p5)
}
  0xec   : > { %s1383_s7 = smov 128   ;;  %s1384_s9 = smov 8  }
  0xed   : > { %1242 = dma.vmem_to_hbm [thread:$0]  (%p1455_p4), %s987_s13, 4096, %s989_s14, %s973_s15, %s1383_s7, %s1383_s7, %s1384_s9  }
  0xee PF: > { %p1248_p6 = scmp.ge.s32.totalorder %s1380_s23, 2  ;;  %s1003_s10 = sand.u32 1, %s1360_s18  }
  0xef   : > { %s1004_s21 = scalar_lea.sflag [#allocation4], %s1003_s10 }
  0xf0   : > { %p1245_p7 = pnand %p1248_p6, %p1462_p8 }
  0xf2   : > { %p1246_p9 = pneg %p1245_p7 }
  0xf4   : > { %1355 = dma.done.wait (%p1246_p9), %s1004_s21, 4096  }
  0xf5   : > { %1357 = vsyncadd (%p1246_p9), %s1004_s21, 4294963200  ;;  %s18_s23 = sadd.s32 1, %s1380_s23   ;;  %s1806_s18 = smov %s1364_s19 }
  0xf6   : > { %p15_p10 = scmp.ge.s32.totalorder %s18_s23, 4   ;;  %s1807_s19 = smov %s1368_s20 }
  0xf7   : > { %s1808_s20 = smov %s1468_s6  ;;  %s1809_s21 = smov %s1376_s22 }
  0xf8   : > { %s1810_s22 = smov %s1812_s26  ;;  %17 = sbr.rel (!%p15_p10) target bundleno = 4 (0x4), region = 95 }
  0xfd   :  { %1010 = vsyncpa [#allocation4], 1 }
  0xfe   :  { %1012 = vsyncpa [#allocation4 + $0x1], 1 }

</bundles_post_ra>
